<compile_context>
chip_gen: v7x
topology: tpu7x:2x2x1
jax: 0.10.0
libtpu: 0.0.40
codegen_flags: <defaults>
</compile_context>

<pallas_src>
import functools
import math

import jax
import jax.numpy as jnp
from jax import lax
from jax.experimental import pallas as pl
from jax.experimental.pallas import tpu as pltpu

LN_EPS = 1e-5
NEG_INF = -1e30  # large finite negative (NaN-safe vs. -inf for masked rows)


def _ln(x, g, b, eps=LN_EPS):
    mu = jnp.mean(x, axis=-1, keepdims=True)
    var = jnp.mean((x - mu) ** 2, axis=-1, keepdims=True)   # biased, like torch
    return (x - mu) * lax.rsqrt(var + eps) * g + b


# ----------------------------------------------------------------------------
# Fused transformer block kernel (one call per block, grid over batch)
# ----------------------------------------------------------------------------

def _block_kernel(*refs, n_heads, causal, cross):
    if cross:
        x_ref, kv_ref = refs[0], refs[1]
        w_refs = refs[2:-1]
    else:
        x_ref, kv_ref = refs[0], None
        w_refs = refs[1:-1]
    o_ref = refs[-1]
    (g1_ref, b1_ref, wq_ref, bq_ref, wkv_ref, bkv_ref, wo_ref, bo_ref,
     g2_ref, b2_ref, w1_ref, bf1_ref, w2_ref, bf2_ref) = w_refs

    _, T, C = x_ref.shape
    Dh = C // n_heads
    scale = 1.0 / math.sqrt(Dh)

    x = x_ref[0].astype(jnp.float32)        # (T, C)  q-stream / residual base
    g1 = g1_ref[...].astype(jnp.float32)
    b1 = b1_ref[...].astype(jnp.float32)

    xq = _ln(x, g1, b1)
    if cross:
        xkv = _ln(kv_ref[0].astype(jnp.float32), g1, b1)
    else:
        xkv = xq                            # self-attention: reuse LN output

    # Fused projections: q (C->C), k|v (C->2C); bf16 MXU inputs, f32 accumulate.
    q = jnp.dot(xq.astype(jnp.bfloat16), wq_ref[...],
                preferred_element_type=jnp.float32) + bq_ref[...]
    kvp = jnp.dot(xkv.astype(jnp.bfloat16), wkv_ref[...],
                  preferred_element_type=jnp.float32) + bkv_ref[...]
    k = kvp[:, :C]
    v = kvp[:, C:]

    if causal:
        rows = lax.broadcasted_iota(jnp.int32, (T, T), 0)
        cols = lax.broadcasted_iota(jnp.int32, (T, T), 1)
        keep = cols <= rows

    head_outs = []
    for h in range(n_heads):                # static unroll, heads live in lanes
        lo, hi = h * Dh, (h + 1) * Dh
        qh = q[:, lo:hi].astype(jnp.bfloat16)
        kh = k[:, lo:hi].astype(jnp.bfloat16)
        vh = v[:, lo:hi].astype(jnp.bfloat16)
        s = lax.dot_general(qh, kh, (((1,), (1,)), ((), ())),
                            preferred_element_type=jnp.float32) * scale
        if causal:
            s = jnp.where(keep, s, NEG_INF)
        s = s - jnp.max(s, axis=-1, keepdims=True)
        p = jnp.exp(s)
        p = p * pl.reciprocal(jnp.sum(p, axis=-1, keepdims=True), approx=True)
        head_outs.append(jnp.dot(p.astype(jnp.bfloat16), vh,
                                 preferred_element_type=jnp.float32))
    attn = jnp.concatenate(head_outs, axis=-1)               # (T, C)

    proj = jnp.dot(attn.astype(jnp.bfloat16), wo_ref[...],
                   preferred_element_type=jnp.float32) + bo_ref[...]
    h1 = x + proj                                            # residual 1

    h2 = _ln(h1, g2_ref[...].astype(jnp.float32), b2_ref[...].astype(jnp.float32))
    ff = jnp.dot(h2.astype(jnp.bfloat16), w1_ref[...],
                 preferred_element_type=jnp.float32) + bf1_ref[...]
    ff = jnp.maximum(ff, 0.0)                                # ReLU
    ff = jnp.dot(ff.astype(jnp.bfloat16), w2_ref[...],
                 preferred_element_type=jnp.float32) + bf2_ref[...]

    o_ref[0] = (h1 + ff).astype(o_ref.dtype)                 # residual 2


_BLOCK_WEIGHT_NAMES = ("g1", "b1", "wq", "bq", "wkv", "bkv", "wo", "bo",
                       "g2", "b2", "w1", "bf1", "w2", "bf2")


def transformer_block(blk, x, kv, n_heads, causal):
    """kv=None means self-attention (single activation stream)."""
    B, T, C = x.shape
    cross = kv is not None
    weights = [blk[name] for name in _BLOCK_WEIGHT_NAMES]

    def full_spec(arr):
        nd = arr.ndim
        return pl.BlockSpec(arr.shape, lambda b, _nd=nd: (0,) * _nd)

    act_spec = pl.BlockSpec((1, T, C), lambda b: (b, 0, 0))
    in_specs = [act_spec] + ([act_spec] if cross else []) \
               + [full_spec(w) for w in weights]
    args = ([x, kv] if cross else [x]) + weights

    return pl.pallas_call(
        functools.partial(_block_kernel, n_heads=n_heads, causal=causal,
                          cross=cross),
        out_shape=jax.ShapeDtypeStruct((B, T, C), x.dtype),
        grid=(B,),
        in_specs=in_specs,
        out_specs=pl.BlockSpec((1, T, C), lambda b: (b, 0, 0)),
        compiler_params=pltpu.CompilerParams(
            dimension_semantics=("parallel",)),
    )(*args)


# ----------------------------------------------------------------------------
# Fused final LayerNorm + lm_head + cross-entropy (tiled over rows)
# ----------------------------------------------------------------------------

def _head_loss_kernel(x_ref, lbl_ref, g_ref, b_ref, w_ref, wb_ref,
                      logits_ref, loss_ref, *, inv_n):
    i = pl.program_id(0)
    x = x_ref[...].astype(jnp.float32)                       # (tm, C)
    xn = _ln(x, g_ref[...].astype(jnp.float32), b_ref[...].astype(jnp.float32))
    z = jnp.dot(xn.astype(jnp.bfloat16), w_ref[...],
                preferred_element_type=jnp.float32) + wb_ref[...]   # (tm, V)
    logits_ref[...] = z.astype(logits_ref.dtype)

    m = jnp.max(z, axis=-1, keepdims=True)
    lse = jnp.log(jnp.sum(jnp.exp(z - m), axis=-1, keepdims=True)) + m
    cols = lax.broadcasted_iota(jnp.int32, z.shape, 1)
    tgt = jnp.sum(jnp.where(cols == lbl_ref[...], z, 0.0),
                  axis=-1, keepdims=True)                    # target logit
    part = jnp.sum(lse - tgt) * inv_n                        # mean reduction

    @pl.when(i == 0)
    def _():
        loss_ref[...] = jnp.zeros_like(loss_ref)

    loss_ref[...] += jnp.reshape(part, (1, 1))


def head_and_loss(x2d, labels, g, b, w, wb, *, tm=8):
    N, C = x2d.shape
    V = w.shape[1]
    assert N % tm == 0
    logits, loss = pl.pallas_call(
        functools.partial(_head_loss_kernel, inv_n=1.0 / N),
        out_shape=(jax.ShapeDtypeStruct((N, V), jnp.float32),
                   jax.ShapeDtypeStruct((1, 1), jnp.float32)),
        grid=(N // tm,),
        in_specs=[
            pl.BlockSpec((tm, C), lambda i: (i, 0)),
            pl.BlockSpec((tm, 1), lambda i: (i, 0)),
            pl.BlockSpec((1, C), lambda i: (0, 0)),
            pl.BlockSpec((1, C), lambda i: (0, 0)),
            pl.BlockSpec((C, V), lambda i: (0, 0)),
            pl.BlockSpec((1, V), lambda i: (0, 0)),
        ],
        out_specs=(pl.BlockSpec((tm, V), lambda i: (i, 0)),
                   pl.BlockSpec((1, 1), lambda i: (0, 0))),
        compiler_params=pltpu.CompilerParams(
            dimension_semantics=("arbitrary",)),
    )(x2d, labels.reshape(N, 1).astype(jnp.int32), g, b, w, wb)
    return logits, loss[0, 0]


# ----------------------------------------------------------------------------
# Parameter init (mirrors LanguageModel.init_weights; matmul weights in bf16)
# ----------------------------------------------------------------------------

def init_params(key, vocab_size, C, block_size, n_layers):
    keys = iter(jax.random.split(key, 16 * n_layers + 16))

    def normal(shape, dtype=jnp.float32):
        return (0.02 * jax.random.normal(next(keys), shape, jnp.float32)).astype(dtype)

    def block_p():
        return {
            "g1": jnp.ones((1, C), jnp.float32),
            "b1": jnp.zeros((1, C), jnp.float32),
            "wq": normal((C, C), jnp.bfloat16),
            "bq": jnp.zeros((1, C), jnp.float32),
            "wkv": normal((C, 2 * C), jnp.bfloat16),      # fused k|v projection
            "bkv": jnp.zeros((1, 2 * C), jnp.float32),
            "wo": normal((C, C), jnp.bfloat16),
            "bo": jnp.zeros((1, C), jnp.float32),
            "g2": jnp.ones((1, C), jnp.float32),
            "b2": jnp.zeros((1, C), jnp.float32),
            "w1": normal((C, 4 * C), jnp.bfloat16),
            "bf1": jnp.zeros((1, 4 * C), jnp.float32),
            "w2": normal((4 * C, C), jnp.bfloat16),
            "bf2": jnp.zeros((1, C), jnp.float32),
        }

    return {
        "tok_emb": normal((vocab_size, C)),
        "pos_emb": normal((block_size, C)),
        "enc": [block_p() for _ in range(n_layers)],
        "dec": [block_p() for _ in range(n_layers)],
        "ln_f_g": jnp.ones((1, C), jnp.float32),
        "ln_f_b": jnp.zeros((1, C), jnp.float32),
        "lm_w": normal((C, vocab_size), jnp.bfloat16),
        "lm_b": jnp.zeros((1, vocab_size), jnp.float32),
    }


# ----------------------------------------------------------------------------
# Forward pass (embedding gathers in plain JAX; everything else fused kernels)
# ----------------------------------------------------------------------------

def language_model_forward(params, x, y, n_heads):
    B, T = x.shape
    C = params["tok_emb"].shape[1]

    pos = params["pos_emb"][:T][None]                        # (1, T, C)
    encoder_out = params["tok_emb"][x] + pos                 # (B, T, C)
    decoder_out = params["tok_emb"][y] + pos                 # (B, T, C)

    for blk in params["enc"]:
        encoder_out = transformer_block(blk, encoder_out, None,
                                        n_heads, causal=False)
    for blk in params["dec"]:
        decoder_out = transformer_block(blk, decoder_out, encoder_out,
                                        n_heads, causal=True)

    logits, loss = head_and_loss(
        decoder_out.reshape(B * T, C), y.reshape(B * T),
        params["ln_f_g"], params["ln_f_b"], params["lm_w"], params["lm_b"])
    return logits, loss


# ----------------------------------------------------------------------------
# Main
# ----------------------------------------------------------------------------

if __name__ == "__main__":
    VOCAB = 64
    EMB = 32
    BLOCK = 8
    N_LAYERS = 2
    N_HEADS = 4
    B, T = 2, BLOCK

    key = jax.random.PRNGKey(0)
    kp, kx, ky = jax.random.split(key, 3)

    params = init_params(kp, VOCAB, EMB, BLOCK, N_LAYERS)
    x = jax.random.randint(kx, (B, T), 0, VOCAB, dtype=jnp.int32)
    y = jax.random.randint(ky, (B, T), 0, VOCAB, dtype=jnp.int32)

    fwd = jax.jit(language_model_forward, static_argnames="n_heads")
    logits, loss = fwd(params, x, y, n_heads=N_HEADS)
    logits = jax.block_until_ready(logits)
    loss = jax.block_until_ready(loss)

    assert logits.shape == (B * T, VOCAB)
    assert bool(jnp.isfinite(loss))
    print("KERNEL_OK")
</pallas_src>

<mosaic_0001>
module attributes {stable_mosaic.version = 11 : i64} {
  func.func @_head_loss_kernel(%arg0: i32, %arg1: memref<8x32xf32, #tpu.memory_space<vmem>>, %arg2: memref<8x1xi32, #tpu.memory_space<vmem>>, %arg3: memref<1x32xf32, #tpu.memory_space<vmem>>, %arg4: memref<1x32xf32, #tpu.memory_space<vmem>>, %arg5: memref<32x64xbf16, #tpu.memory_space<vmem>>, %arg6: memref<1x64xf32, #tpu.memory_space<vmem>>, %arg7: memref<8x64xf32, #tpu.memory_space<vmem>>, %arg8: memref<1x1xf32, #tpu.memory_space<vmem>>) attributes {dimension_semantics = [#tpu.dimension_semantics<arbitrary>], iteration_bounds = array<i64: 2>, scalar_prefetch = 0 : i64, scratch_operands = 0 : i64, tpu.core_type = #tpu.core_type<tc>, window_params = [{transform_indices = @transform_0, window_bounds = array<i64: 8, 32>}, {transform_indices = @transform_1, window_bounds = array<i64: 8, 1>}, {pipeline_mode = #tpu.pipeline_mode<synchronous>, transform_indices = @transform_2, window_bounds = array<i64: 1, 32>}, {pipeline_mode = #tpu.pipeline_mode<synchronous>, transform_indices = @transform_3, window_bounds = array<i64: 1, 32>}, {pipeline_mode = #tpu.pipeline_mode<synchronous>, transform_indices = @transform_4, window_bounds = array<i64: 32, 64>}, {pipeline_mode = #tpu.pipeline_mode<synchronous>, transform_indices = @transform_5, window_bounds = array<i64: 1, 64>}, {transform_indices = @transform_6, window_bounds = array<i64: 8, 64>}, {pipeline_mode = #tpu.pipeline_mode<synchronous>, transform_indices = @transform_7, window_bounds = array<i64: 1, 1>}]} {
    %c0 = arith.constant 0 : index
    %c0_0 = arith.constant 0 : index
    %0 = vector.load %arg1[%c0, %c0_0] : memref<8x32xf32, #tpu.memory_space<vmem>>, vector<8x32xf32>
    %c0_1 = arith.constant 0 : index
    %c0_2 = arith.constant 0 : index
    %1 = vector.load %arg3[%c0_1, %c0_2] : memref<1x32xf32, #tpu.memory_space<vmem>>, vector<1x32xf32>
    %c0_3 = arith.constant 0 : index
    %c0_4 = arith.constant 0 : index
    %2 = vector.load %arg4[%c0_3, %c0_4] : memref<1x32xf32, #tpu.memory_space<vmem>>, vector<1x32xf32>
    %cst = arith.constant dense<0.000000e+00> : vector<8xf32>
    %3 = vector.multi_reduction <add>, %0, %cst [1] : vector<8x32xf32> to vector<8xf32>
    %4 = vector.shape_cast %3 : vector<8xf32> to vector<8x1xf32>
    %cst_5 = arith.constant 3.200000e+01 : f32
    %5 = vector.broadcast %cst_5 : f32 to vector<8x1xf32>
    %6 = arith.divf %4, %5 : vector<8x1xf32>
    %7 = vector.broadcast %6 : vector<8x1xf32> to vector<8x32xf32>
    %8 = arith.subf %0, %7 : vector<8x32xf32>
    %9 = arith.mulf %8, %8 : vector<8x32xf32>
    %cst_6 = arith.constant dense<0.000000e+00> : vector<8xf32>
    %10 = vector.multi_reduction <add>, %9, %cst_6 [1] : vector<8x32xf32> to vector<8xf32>
    %11 = vector.shape_cast %10 : vector<8xf32> to vector<8x1xf32>
    %cst_7 = arith.constant 3.200000e+01 : f32
    %12 = vector.broadcast %cst_7 : f32 to vector<8x1xf32>
    %13 = arith.divf %11, %12 : vector<8x1xf32>
    %14 = vector.broadcast %6 : vector<8x1xf32> to vector<8x32xf32>
    %15 = arith.subf %0, %14 : vector<8x32xf32>
    %cst_8 = arith.constant 9.99999974E-6 : f32
    %16 = vector.broadcast %cst_8 : f32 to vector<8x1xf32>
    %17 = arith.addf %13, %16 : vector<8x1xf32>
    %18 = math.rsqrt %17 : vector<8x1xf32>
    %19 = vector.broadcast %18 : vector<8x1xf32> to vector<8x32xf32>
    %20 = arith.mulf %15, %19 : vector<8x32xf32>
    %21 = vector.broadcast %1 : vector<1x32xf32> to vector<8x32xf32>
    %22 = arith.mulf %20, %21 : vector<8x32xf32>
    %23 = vector.broadcast %2 : vector<1x32xf32> to vector<8x32xf32>
    %24 = arith.addf %22, %23 : vector<8x32xf32>
    %25 = arith.truncf %24 : vector<8x32xf32> to vector<8x32xbf16>
    %c0_9 = arith.constant 0 : index
    %c0_10 = arith.constant 0 : index
    %26 = vector.load %arg5[%c0_9, %c0_10] : memref<32x64xbf16, #tpu.memory_space<vmem>>, vector<32x64xbf16>
    %cst_11 = arith.constant dense<0.000000e+00> : vector<8x64xf32>
    %27 = tpu.matmul %25, %26, %cst_11 {dimension_numbers = #tpu.dot_dimension_numbers<[1], [0], [0], [1], [0, 0, 1, 1], [], []>} : vector<8x32xbf16>, vector<32x64xbf16>, vector<8x64xf32> -> vector<8x64xf32>
    %c0_12 = arith.constant 0 : index
    %c0_13 = arith.constant 0 : index
    %28 = vector.load %arg6[%c0_12, %c0_13] : memref<1x64xf32, #tpu.memory_space<vmem>>, vector<1x64xf32>
    %29 = vector.broadcast %28 : vector<1x64xf32> to vector<8x64xf32>
    %30 = arith.addf %27, %29 : vector<8x64xf32>
    %c0_14 = arith.constant 0 : index
    %c0_15 = arith.constant 0 : index
    %31 = vector.load %arg7[%c0_14, %c0_15] : memref<8x64xf32, #tpu.memory_space<vmem>>, vector<8x64xf32>
    tpu.vector_store %arg7[%c0_14, %c0_15], %30 {strides = array<i32>} : memref<8x64xf32, #tpu.memory_space<vmem>>, vector<8x64xf32>,
    %cst_16 = arith.constant dense<0xFF800000> : vector<8xf32>
    %32 = vector.multi_reduction <maximumf>, %30, %cst_16 [1] : vector<8x64xf32> to vector<8xf32>
    %33 = vector.shape_cast %32 : vector<8xf32> to vector<8x1xf32>
    %34 = vector.broadcast %33 : vector<8x1xf32> to vector<8x64xf32>
    %35 = arith.subf %30, %34 : vector<8x64xf32>
    %36 = math.exp %35 : vector<8x64xf32>
    %cst_17 = arith.constant dense<0.000000e+00> : vector<8xf32>
    %37 = vector.multi_reduction <add>, %36, %cst_17 [1] : vector<8x64xf32> to vector<8xf32>
    %38 = vector.shape_cast %37 : vector<8xf32> to vector<8x1xf32>
    %39 = math.log %38 : vector<8x1xf32>
    %40 = arith.addf %39, %33 : vector<8x1xf32>
    %41 = tpu.iota {dimensions = array<i32: 1>} : vector<8x64xi32>
    %c0_18 = arith.constant 0 : index
    %c0_19 = arith.constant 0 : index
    %42 = vector.load %arg2[%c0_18, %c0_19] : memref<8x1xi32, #tpu.memory_space<vmem>>, vector<8x1xi32>
    %43 = vector.broadcast %42 : vector<8x1xi32> to vector<8x64xi32>
    %44 = arith.cmpi eq, %41, %43 : vector<8x64xi32>
    %cst_20 = arith.constant 0.000000e+00 : f32
    %45 = vector.broadcast %cst_20 : f32 to vector<8x64xf32>
    %46 = arith.select %44, %30, %45 : vector<8x64xi1>, vector<8x64xf32>
    %cst_21 = arith.constant dense<0.000000e+00> : vector<8xf32>
    %47 = vector.multi_reduction <add>, %46, %cst_21 [1] : vector<8x64xf32> to vector<8xf32>
    %48 = vector.shape_cast %47 : vector<8xf32> to vector<8x1xf32>
    %49 = arith.subf %40, %48 : vector<8x1xf32>
    %50 = vector.shape_cast %49 : vector<8x1xf32> to vector<1x8x1xf32>
    %cst_22 = arith.constant dense<0.000000e+00> : vector<1xf32>
    %51 = vector.multi_reduction <add>, %50, %cst_22 [1, 2] : vector<1x8x1xf32> to vector<1xf32>
    %52 = vector.shape_cast %51 : vector<1xf32> to vector<1x1x1xf32>
    %53 = vector.extract %52[0, 0, 0] : f32 from vector<1x1x1xf32>
    %cst_23 = arith.constant 6.250000e-02 : f32
    %54 = arith.mulf %53, %cst_23 : f32
    %c0_i32 = arith.constant 0 : i32
    %55 = arith.cmpi eq, %arg0, %c0_i32 : i32
    %56 = arith.extui %55 : i1 to i32
    %c0_i32_24 = arith.constant 0 : i32
    %57 = arith.cmpi ne, %56, %c0_i32_24 : i32
    scf.if %57 {
      %cst_29 = arith.constant 0.000000e+00 : f32
      %62 = vector.broadcast %cst_29 : f32 to vector<1x1xf32>
      %c0_30 = arith.constant 0 : index
      %c0_31 = arith.constant 0 : index
      %63 = vector.load %arg8[%c0_30, %c0_31] : memref<1x1xf32, #tpu.memory_space<vmem>>, vector<1x1xf32>
      tpu.vector_store %arg8[%c0_30, %c0_31], %62 {strides = array<i32>} : memref<1x1xf32, #tpu.memory_space<vmem>>, vector<1x1xf32>,
    } else {
    }
    %c0_25 = arith.constant 0 : index
    %c0_26 = arith.constant 0 : index
    %58 = vector.load %arg8[%c0_25, %c0_26] : memref<1x1xf32, #tpu.memory_space<vmem>>, vector<1x1xf32>
    %59 = vector.broadcast %54 : f32 to vector<1x1xf32>
    %60 = arith.addf %58, %59 : vector<1x1xf32>
    %c0_27 = arith.constant 0 : index
    %c0_28 = arith.constant 0 : index
    %61 = vector.load %arg8[%c0_27, %c0_28] : memref<1x1xf32, #tpu.memory_space<vmem>>, vector<1x1xf32>
    tpu.vector_store %arg8[%c0_27, %c0_28], %60 {strides = array<i32>} : memref<1x1xf32, #tpu.memory_space<vmem>>, vector<1x1xf32>,
    return
  }
  func.func @transform_0(%arg0: i32) -> (i32, i32) {
    %c0_i32 = arith.constant 0 : i32
    %c0_i32_0 = arith.constant 0 : i32
    return %arg0, %c0_i32 : i32, i32
  }
  func.func @transform_1(%arg0: i32) -> (i32, i32) {
    %c0_i32 = arith.constant 0 : i32
    %c0_i32_0 = arith.constant 0 : i32
    return %arg0, %c0_i32 : i32, i32
  }
  func.func @transform_2(%arg0: i32) -> (i32, i32) {
    %c0_i32 = arith.constant 0 : i32
    %c0_i32_0 = arith.constant 0 : i32
    %c0_i32_1 = arith.constant 0 : i32
    return %c0_i32, %c0_i32_0 : i32, i32
  }
  func.func @transform_3(%arg0: i32) -> (i32, i32) {
    %c0_i32 = arith.constant 0 : i32
    %c0_i32_0 = arith.constant 0 : i32
    %c0_i32_1 = arith.constant 0 : i32
    return %c0_i32, %c0_i32_0 : i32, i32
  }
  func.func @transform_4(%arg0: i32) -> (i32, i32) {
    %c0_i32 = arith.constant 0 : i32
    %c0_i32_0 = arith.constant 0 : i32
    %c0_i32_1 = arith.constant 0 : i32
    return %c0_i32, %c0_i32_0 : i32, i32
  }
  func.func @transform_5(%arg0: i32) -> (i32, i32) {
    %c0_i32 = arith.constant 0 : i32
    %c0_i32_0 = arith.constant 0 : i32
    %c0_i32_1 = arith.constant 0 : i32
    return %c0_i32, %c0_i32_0 : i32, i32
  }
  func.func @transform_6(%arg0: i32) -> (i32, i32) {
    %c0_i32 = arith.constant 0 : i32
    %c0_i32_0 = arith.constant 0 : i32
    return %arg0, %c0_i32 : i32, i32
  }
  func.func @transform_7(%arg0: i32) -> (i32, i32) {
    %c0_i32 = arith.constant 0 : i32
    %c0_i32_0 = arith.constant 0 : i32
    %c0_i32_1 = arith.constant 0 : i32
    return %c0_i32, %c0_i32_0 : i32, i32
  }
}

module attributes {stable_mosaic.version = 11 : i64} {
  func.func @_block_kernel(%arg0: i32, %arg1: memref<1x8x32xf32, #tpu.memory_space<vmem>>, %arg2: memref<1x32xf32, #tpu.memory_space<vmem>>, %arg3: memref<1x32xf32, #tpu.memory_space<vmem>>, %arg4: memref<32x32xbf16, #tpu.memory_space<vmem>>, %arg5: memref<1x32xf32, #tpu.memory_space<vmem>>, %arg6: memref<32x64xbf16, #tpu.memory_space<vmem>>, %arg7: memref<1x64xf32, #tpu.memory_space<vmem>>, %arg8: memref<32x32xbf16, #tpu.memory_space<vmem>>, %arg9: memref<1x32xf32, #tpu.memory_space<vmem>>, %arg10: memref<1x32xf32, #tpu.memory_space<vmem>>, %arg11: memref<1x32xf32, #tpu.memory_space<vmem>>, %arg12: memref<32x128xbf16, #tpu.memory_space<vmem>>, %arg13: memref<1x128xf32, #tpu.memory_space<vmem>>, %arg14: memref<128x32xbf16, #tpu.memory_space<vmem>>, %arg15: memref<1x32xf32, #tpu.memory_space<vmem>>, %arg16: memref<1x8x32xf32, #tpu.memory_space<vmem>>) attributes {dimension_semantics = [#tpu.dimension_semantics<parallel>], iteration_bounds = array<i64: 2>, scalar_prefetch = 0 : i64, scratch_operands = 0 : i64, tpu.core_type = #tpu.core_type<tc>, window_params = [{transform_indices = @transform_0, window_bounds = array<i64: 1, 8, 32>}, {pipeline_mode = #tpu.pipeline_mode<synchronous>, transform_indices = @transform_1, window_bounds = array<i64: 1, 32>}, {pipeline_mode = #tpu.pipeline_mode<synchronous>, transform_indices = @transform_2, window_bounds = array<i64: 1, 32>}, {pipeline_mode = #tpu.pipeline_mode<synchronous>, transform_indices = @transform_3, window_bounds = array<i64: 32, 32>}, {pipeline_mode = #tpu.pipeline_mode<synchronous>, transform_indices = @transform_4, window_bounds = array<i64: 1, 32>}, {pipeline_mode = #tpu.pipeline_mode<synchronous>, transform_indices = @transform_5, window_bounds = array<i64: 32, 64>}, {pipeline_mode = #tpu.pipeline_mode<synchronous>, transform_indices = @transform_6, window_bounds = array<i64: 1, 64>}, {pipeline_mode = #tpu.pipeline_mode<synchronous>, transform_indices = @transform_7, window_bounds = array<i64: 32, 32>}, {pipeline_mode = #tpu.pipeline_mode<synchronous>, transform_indices = @transform_8, window_bounds = array<i64: 1, 32>}, {pipeline_mode = #tpu.pipeline_mode<synchronous>, transform_indices = @transform_9, window_bounds = array<i64: 1, 32>}, {pipeline_mode = #tpu.pipeline_mode<synchronous>, transform_indices = @transform_10, window_bounds = array<i64: 1, 32>}, {pipeline_mode = #tpu.pipeline_mode<synchronous>, transform_indices = @transform_11, window_bounds = array<i64: 32, 128>}, {pipeline_mode = #tpu.pipeline_mode<synchronous>, transform_indices = @transform_12, window_bounds = array<i64: 1, 128>}, {pipeline_mode = #tpu.pipeline_mode<synchronous>, transform_indices = @transform_13, window_bounds = array<i64: 128, 32>}, {pipeline_mode = #tpu.pipeline_mode<synchronous>, transform_indices = @transform_14, window_bounds = array<i64: 1, 32>}, {transform_indices = @transform_15, window_bounds = array<i64: 1, 8, 32>}]} {
    %c0 = arith.constant 0 : index
    %c0_0 = arith.constant 0 : index
    %c0_1 = arith.constant 0 : index
    %0 = vector.load %arg1[%c0, %c0_0, %c0_1] : memref<1x8x32xf32, #tpu.memory_space<vmem>>, vector<1x8x32xf32>
    %1 = vector.shape_cast %0 : vector<1x8x32xf32> to vector<8x32xf32>
    %c0_2 = arith.constant 0 : index
    %c0_3 = arith.constant 0 : index
    %2 = vector.load %arg2[%c0_2, %c0_3] : memref<1x32xf32, #tpu.memory_space<vmem>>, vector<1x32xf32>
    %c0_4 = arith.constant 0 : index
    %c0_5 = arith.constant 0 : index
    %3 = vector.load %arg3[%c0_4, %c0_5] : memref<1x32xf32, #tpu.memory_space<vmem>>, vector<1x32xf32>
    %cst = arith.constant dense<0.000000e+00> : vector<8xf32>
    %4 = vector.multi_reduction <add>, %1, %cst [1] : vector<8x32xf32> to vector<8xf32>
    %5 = vector.shape_cast %4 : vector<8xf32> to vector<8x1xf32>
    %cst_6 = arith.constant 3.200000e+01 : f32
    %6 = vector.broadcast %cst_6 : f32 to vector<8x1xf32>
    %7 = arith.divf %5, %6 : vector<8x1xf32>
    %8 = vector.broadcast %7 : vector<8x1xf32> to vector<8x32xf32>
    %9 = arith.subf %1, %8 : vector<8x32xf32>
    %10 = arith.mulf %9, %9 : vector<8x32xf32>
    %cst_7 = arith.constant dense<0.000000e+00> : vector<8xf32>
    %11 = vector.multi_reduction <add>, %10, %cst_7 [1] : vector<8x32xf32> to vector<8xf32>
    %12 = vector.shape_cast %11 : vector<8xf32> to vector<8x1xf32>
    %cst_8 = arith.constant 3.200000e+01 : f32
    %13 = vector.broadcast %cst_8 : f32 to vector<8x1xf32>
    %14 = arith.divf %12, %13 : vector<8x1xf32>
    %15 = vector.broadcast %7 : vector<8x1xf32> to vector<8x32xf32>
    %16 = arith.subf %1, %15 : vector<8x32xf32>
    %cst_9 = arith.constant 9.99999974E-6 : f32
    %17 = vector.broadcast %cst_9 : f32 to vector<8x1xf32>
    %18 = arith.addf %14, %17 : vector<8x1xf32>
    %19 = math.rsqrt %18 : vector<8x1xf32>
    %20 = vector.broadcast %19 : vector<8x1xf32> to vector<8x32xf32>
    %21 = arith.mulf %16, %20 : vector<8x32xf32>
    %22 = vector.broadcast %2 : vector<1x32xf32> to vector<8x32xf32>
    %23 = arith.mulf %21, %22 : vector<8x32xf32>
    %24 = vector.broadcast %3 : vector<1x32xf32> to vector<8x32xf32>
    %25 = arith.addf %23, %24 : vector<8x32xf32>
    %26 = arith.truncf %25 : vector<8x32xf32> to vector<8x32xbf16>
    %c0_10 = arith.constant 0 : index
    %c0_11 = arith.constant 0 : index
    %27 = vector.load %arg4[%c0_10, %c0_11] : memref<32x32xbf16, #tpu.memory_space<vmem>>, vector<32x32xbf16>
    %cst_12 = arith.constant dense<0.000000e+00> : vector<8x32xf32>
    %28 = tpu.matmul %26, %27, %cst_12 {dimension_numbers = #tpu.dot_dimension_numbers<[1], [0], [0], [1], [0, 0, 1, 1], [], []>} : vector<8x32xbf16>, vector<32x32xbf16>, vector<8x32xf32> -> vector<8x32xf32>
    %c0_13 = arith.constant 0 : index
    %c0_14 = arith.constant 0 : index
    %29 = vector.load %arg5[%c0_13, %c0_14] : memref<1x32xf32, #tpu.memory_space<vmem>>, vector<1x32xf32>
    %30 = vector.broadcast %29 : vector<1x32xf32> to vector<8x32xf32>
    %31 = arith.addf %28, %30 : vector<8x32xf32>
    %32 = arith.truncf %25 : vector<8x32xf32> to vector<8x32xbf16>
    %c0_15 = arith.constant 0 : index
    %c0_16 = arith.constant 0 : index
    %33 = vector.load %arg6[%c0_15, %c0_16] : memref<32x64xbf16, #tpu.memory_space<vmem>>, vector<32x64xbf16>
    %cst_17 = arith.constant dense<0.000000e+00> : vector<8x64xf32>
    %34 = tpu.matmul %32, %33, %cst_17 {dimension_numbers = #tpu.dot_dimension_numbers<[1], [0], [0], [1], [0, 0, 1, 1], [], []>} : vector<8x32xbf16>, vector<32x64xbf16>, vector<8x64xf32> -> vector<8x64xf32>
    %c0_18 = arith.constant 0 : index
    %c0_19 = arith.constant 0 : index
    %35 = vector.load %arg7[%c0_18, %c0_19] : memref<1x64xf32, #tpu.memory_space<vmem>>, vector<1x64xf32>
    %36 = vector.broadcast %35 : vector<1x64xf32> to vector<8x64xf32>
    %37 = arith.addf %34, %36 : vector<8x64xf32>
    %38 = vector.extract_strided_slice %37 {offsets = [0, 0], sizes = [8, 32], strides = [1, 1]} : vector<8x64xf32> to vector<8x32xf32>
    %39 = vector.extract_strided_slice %37 {offsets = [0, 32], sizes = [8, 32], strides = [1, 1]} : vector<8x64xf32> to vector<8x32xf32>
    %40 = vector.extract_strided_slice %31 {offsets = [0, 0], sizes = [8, 8], strides = [1, 1]} : vector<8x32xf32> to vector<8x8xf32>
    %41 = arith.truncf %40 : vector<8x8xf32> to vector<8x8xbf16>
    %42 = vector.extract_strided_slice %38 {offsets = [0, 0], sizes = [8, 8], strides = [1, 1]} : vector<8x32xf32> to vector<8x8xf32>
    %43 = arith.truncf %42 : vector<8x8xf32> to vector<8x8xbf16>
    %44 = vector.extract_strided_slice %39 {offsets = [0, 0], sizes = [8, 8], strides = [1, 1]} : vector<8x32xf32> to vector<8x8xf32>
    %45 = arith.truncf %44 : vector<8x8xf32> to vector<8x8xbf16>
    %cst_20 = arith.constant dense<0.000000e+00> : vector<8x8xf32>
    %46 = tpu.matmul %41, %43, %cst_20 {dimension_numbers = #tpu.dot_dimension_numbers<[1], [1], [0], [0], [0, 0, 1, 0], [], []>} : vector<8x8xbf16>, vector<8x8xbf16>, vector<8x8xf32> -> vector<8x8xf32>
    %cst_21 = arith.constant 0.353553385 : f32
    %47 = vector.broadcast %cst_21 : f32 to vector<8x8xf32>
    %48 = arith.mulf %46, %47 : vector<8x8xf32>
    %cst_22 = arith.constant dense<0xFF800000> : vector<8xf32>
    %49 = vector.multi_reduction <maximumf>, %48, %cst_22 [1] : vector<8x8xf32> to vector<8xf32>
    %50 = vector.shape_cast %49 : vector<8xf32> to vector<8x1xf32>
    %51 = vector.broadcast %50 : vector<8x1xf32> to vector<8x8xf32>
    %52 = arith.subf %48, %51 : vector<8x8xf32>
    %53 = math.exp %52 : vector<8x8xf32>
    %cst_23 = arith.constant dense<0.000000e+00> : vector<8xf32>
    %54 = vector.multi_reduction <add>, %53, %cst_23 [1] : vector<8x8xf32> to vector<8xf32>
    %55 = vector.shape_cast %54 : vector<8xf32> to vector<8x1xf32>
    %56 = tpu.reciprocal %55 {approx = true} : vector<8x1xf32> -> vector<8x1xf32>
    %57 = vector.broadcast %56 : vector<8x1xf32> to vector<8x8xf32>
    %58 = arith.mulf %53, %57 : vector<8x8xf32>
    %59 = arith.truncf %58 : vector<8x8xf32> to vector<8x8xbf16>
    %cst_24 = arith.constant dense<0.000000e+00> : vector<8x8xf32>
    %60 = tpu.matmul %59, %45, %cst_24 {dimension_numbers = #tpu.dot_dimension_numbers<[1], [0], [0], [1], [0, 0, 1, 1], [], []>} : vector<8x8xbf16>, vector<8x8xbf16>, vector<8x8xf32> -> vector<8x8xf32>
    %61 = vector.extract_strided_slice %31 {offsets = [0, 8], sizes = [8, 8], strides = [1, 1]} : vector<8x32xf32> to vector<8x8xf32>
    %62 = arith.truncf %61 : vector<8x8xf32> to vector<8x8xbf16>
    %63 = vector.extract_strided_slice %38 {offsets = [0, 8], sizes = [8, 8], strides = [1, 1]} : vector<8x32xf32> to vector<8x8xf32>
    %64 = arith.truncf %63 : vector<8x8xf32> to vector<8x8xbf16>
    %65 = vector.extract_strided_slice %39 {offsets = [0, 8], sizes = [8, 8], strides = [1, 1]} : vector<8x32xf32> to vector<8x8xf32>
    %66 = arith.truncf %65 : vector<8x8xf32> to vector<8x8xbf16>
    %cst_25 = arith.constant dense<0.000000e+00> : vector<8x8xf32>
    %67 = tpu.matmul %62, %64, %cst_25 {dimension_numbers = #tpu.dot_dimension_numbers<[1], [1], [0], [0], [0, 0, 1, 0], [], []>} : vector<8x8xbf16>, vector<8x8xbf16>, vector<8x8xf32> -> vector<8x8xf32>
    %cst_26 = arith.constant 0.353553385 : f32
    %68 = vector.broadcast %cst_26 : f32 to vector<8x8xf32>
    %69 = arith.mulf %67, %68 : vector<8x8xf32>
    %cst_27 = arith.constant dense<0xFF800000> : vector<8xf32>
    %70 = vector.multi_reduction <maximumf>, %69, %cst_27 [1] : vector<8x8xf32> to vector<8xf32>
    %71 = vector.shape_cast %70 : vector<8xf32> to vector<8x1xf32>
    %72 = vector.broadcast %71 : vector<8x1xf32> to vector<8x8xf32>
    %73 = arith.subf %69, %72 : vector<8x8xf32>
    %74 = math.exp %73 : vector<8x8xf32>
    %cst_28 = arith.constant dense<0.000000e+00> : vector<8xf32>
    %75 = vector.multi_reduction <add>, %74, %cst_28 [1] : vector<8x8xf32> to vector<8xf32>
    %76 = vector.shape_cast %75 : vector<8xf32> to vector<8x1xf32>
    %77 = tpu.reciprocal %76 {approx = true} : vector<8x1xf32> -> vector<8x1xf32>
    %78 = vector.broadcast %77 : vector<8x1xf32> to vector<8x8xf32>
    %79 = arith.mulf %74, %78 : vector<8x8xf32>
    %80 = arith.truncf %79 : vector<8x8xf32> to vector<8x8xbf16>
    %cst_29 = arith.constant dense<0.000000e+00> : vector<8x8xf32>
    %81 = tpu.matmul %80, %66, %cst_29 {dimension_numbers = #tpu.dot_dimension_numbers<[1], [0], [0], [1], [0, 0, 1, 1], [], []>} : vector<8x8xbf16>, vector<8x8xbf16>, vector<8x8xf32> -> vector<8x8xf32>
    %82 = vector.extract_strided_slice %31 {offsets = [0, 16], sizes = [8, 8], strides = [1, 1]} : vector<8x32xf32> to vector<8x8xf32>
    %83 = arith.truncf %82 : vector<8x8xf32> to vector<8x8xbf16>
    %84 = vector.extract_strided_slice %38 {offsets = [0, 16], sizes = [8, 8], strides = [1, 1]} : vector<8x32xf32> to vector<8x8xf32>
    %85 = arith.truncf %84 : vector<8x8xf32> to vector<8x8xbf16>
    %86 = vector.extract_strided_slice %39 {offsets = [0, 16], sizes = [8, 8], strides = [1, 1]} : vector<8x32xf32> to vector<8x8xf32>
    %87 = arith.truncf %86 : vector<8x8xf32> to vector<8x8xbf16>
    %cst_30 = arith.constant dense<0.000000e+00> : vector<8x8xf32>
    %88 = tpu.matmul %83, %85, %cst_30 {dimension_numbers = #tpu.dot_dimension_numbers<[1], [1], [0], [0], [0, 0, 1, 0], [], []>} : vector<8x8xbf16>, vector<8x8xbf16>, vector<8x8xf32> -> vector<8x8xf32>
    %cst_31 = arith.constant 0.353553385 : f32
    %89 = vector.broadcast %cst_31 : f32 to vector<8x8xf32>
    %90 = arith.mulf %88, %89 : vector<8x8xf32>
    %cst_32 = arith.constant dense<0xFF800000> : vector<8xf32>
    %91 = vector.multi_reduction <maximumf>, %90, %cst_32 [1] : vector<8x8xf32> to vector<8xf32>
    %92 = vector.shape_cast %91 : vector<8xf32> to vector<8x1xf32>
    %93 = vector.broadcast %92 : vector<8x1xf32> to vector<8x8xf32>
    %94 = arith.subf %90, %93 : vector<8x8xf32>
    %95 = math.exp %94 : vector<8x8xf32>
    %cst_33 = arith.constant dense<0.000000e+00> : vector<8xf32>
    %96 = vector.multi_reduction <add>, %95, %cst_33 [1] : vector<8x8xf32> to vector<8xf32>
    %97 = vector.shape_cast %96 : vector<8xf32> to vector<8x1xf32>
    %98 = tpu.reciprocal %97 {approx = true} : vector<8x1xf32> -> vector<8x1xf32>
    %99 = vector.broadcast %98 : vector<8x1xf32> to vector<8x8xf32>
    %100 = arith.mulf %95, %99 : vector<8x8xf32>
    %101 = arith.truncf %100 : vector<8x8xf32> to vector<8x8xbf16>
    %cst_34 = arith.constant dense<0.000000e+00> : vector<8x8xf32>
    %102 = tpu.matmul %101, %87, %cst_34 {dimension_numbers = #tpu.dot_dimension_numbers<[1], [0], [0], [1], [0, 0, 1, 1], [], []>} : vector<8x8xbf16>, vector<8x8xbf16>, vector<8x8xf32> -> vector<8x8xf32>
    %103 = vector.extract_strided_slice %31 {offsets = [0, 24], sizes = [8, 8], strides = [1, 1]} : vector<8x32xf32> to vector<8x8xf32>
    %104 = arith.truncf %103 : vector<8x8xf32> to vector<8x8xbf16>
    %105 = vector.extract_strided_slice %38 {offsets = [0, 24], sizes = [8, 8], strides = [1, 1]} : vector<8x32xf32> to vector<8x8xf32>
    %106 = arith.truncf %105 : vector<8x8xf32> to vector<8x8xbf16>
    %107 = vector.extract_strided_slice %39 {offsets = [0, 24], sizes = [8, 8], strides = [1, 1]} : vector<8x32xf32> to vector<8x8xf32>
    %108 = arith.truncf %107 : vector<8x8xf32> to vector<8x8xbf16>
    %cst_35 = arith.constant dense<0.000000e+00> : vector<8x8xf32>
    %109 = tpu.matmul %104, %106, %cst_35 {dimension_numbers = #tpu.dot_dimension_numbers<[1], [1], [0], [0], [0, 0, 1, 0], [], []>} : vector<8x8xbf16>, vector<8x8xbf16>, vector<8x8xf32> -> vector<8x8xf32>
    %cst_36 = arith.constant 0.353553385 : f32
    %110 = vector.broadcast %cst_36 : f32 to vector<8x8xf32>
    %111 = arith.mulf %109, %110 : vector<8x8xf32>
    %cst_37 = arith.constant dense<0xFF800000> : vector<8xf32>
    %112 = vector.multi_reduction <maximumf>, %111, %cst_37 [1] : vector<8x8xf32> to vector<8xf32>
    %113 = vector.shape_cast %112 : vector<8xf32> to vector<8x1xf32>
    %114 = vector.broadcast %113 : vector<8x1xf32> to vector<8x8xf32>
    %115 = arith.subf %111, %114 : vector<8x8xf32>
    %116 = math.exp %115 : vector<8x8xf32>
    %cst_38 = arith.constant dense<0.000000e+00> : vector<8xf32>
    %117 = vector.multi_reduction <add>, %116, %cst_38 [1] : vector<8x8xf32> to vector<8xf32>
    %118 = vector.shape_cast %117 : vector<8xf32> to vector<8x1xf32>
    %119 = tpu.reciprocal %118 {approx = true} : vector<8x1xf32> -> vector<8x1xf32>
    %120 = vector.broadcast %119 : vector<8x1xf32> to vector<8x8xf32>
    %121 = arith.mulf %116, %120 : vector<8x8xf32>
    %122 = arith.truncf %121 : vector<8x8xf32> to vector<8x8xbf16>
    %cst_39 = arith.constant dense<0.000000e+00> : vector<8x8xf32>
    %123 = tpu.matmul %122, %108, %cst_39 {dimension_numbers = #tpu.dot_dimension_numbers<[1], [0], [0], [1], [0, 0, 1, 1], [], []>} : vector<8x8xbf16>, vector<8x8xbf16>, vector<8x8xf32> -> vector<8x8xf32>
    %124 = tpu.concatenate %60, %81, %102, %123 in 1 : vector<8x8xf32>, vector<8x8xf32>, vector<8x8xf32>, vector<8x8xf32> -> vector<8x32xf32>
    %125 = arith.truncf %124 : vector<8x32xf32> to vector<8x32xbf16>
    %c0_40 = arith.constant 0 : index
    %c0_41 = arith.constant 0 : index
    %126 = vector.load %arg8[%c0_40, %c0_41] : memref<32x32xbf16, #tpu.memory_space<vmem>>, vector<32x32xbf16>
    %cst_42 = arith.constant dense<0.000000e+00> : vector<8x32xf32>
    %127 = tpu.matmul %125, %126, %cst_42 {dimension_numbers = #tpu.dot_dimension_numbers<[1], [0], [0], [1], [0, 0, 1, 1], [], []>} : vector<8x32xbf16>, vector<32x32xbf16>, vector<8x32xf32> -> vector<8x32xf32>
    %c0_43 = arith.constant 0 : index
    %c0_44 = arith.constant 0 : index
    %128 = vector.load %arg9[%c0_43, %c0_44] : memref<1x32xf32, #tpu.memory_space<vmem>>, vector<1x32xf32>
    %129 = vector.broadcast %128 : vector<1x32xf32> to vector<8x32xf32>
    %130 = arith.addf %127, %129 : vector<8x32xf32>
    %131 = arith.addf %1, %130 : vector<8x32xf32>
    %c0_45 = arith.constant 0 : index
    %c0_46 = arith.constant 0 : index
    %132 = vector.load %arg10[%c0_45, %c0_46] : memref<1x32xf32, #tpu.memory_space<vmem>>, vector<1x32xf32>
    %c0_47 = arith.constant 0 : index
    %c0_48 = arith.constant 0 : index
    %133 = vector.load %arg11[%c0_47, %c0_48] : memref<1x32xf32, #tpu.memory_space<vmem>>, vector<1x32xf32>
    %cst_49 = arith.constant dense<0.000000e+00> : vector<8xf32>
    %134 = vector.multi_reduction <add>, %131, %cst_49 [1] : vector<8x32xf32> to vector<8xf32>
    %135 = vector.shape_cast %134 : vector<8xf32> to vector<8x1xf32>
    %cst_50 = arith.constant 3.200000e+01 : f32
    %136 = vector.broadcast %cst_50 : f32 to vector<8x1xf32>
    %137 = arith.divf %135, %136 : vector<8x1xf32>
    %138 = vector.broadcast %137 : vector<8x1xf32> to vector<8x32xf32>
    %139 = arith.subf %131, %138 : vector<8x32xf32>
    %140 = arith.mulf %139, %139 : vector<8x32xf32>
    %cst_51 = arith.constant dense<0.000000e+00> : vector<8xf32>
    %141 = vector.multi_reduction <add>, %140, %cst_51 [1] : vector<8x32xf32> to vector<8xf32>
    %142 = vector.shape_cast %141 : vector<8xf32> to vector<8x1xf32>
    %cst_52 = arith.constant 3.200000e+01 : f32
    %143 = vector.broadcast %cst_52 : f32 to vector<8x1xf32>
    %144 = arith.divf %142, %143 : vector<8x1xf32>
    %145 = vector.broadcast %137 : vector<8x1xf32> to vector<8x32xf32>
    %146 = arith.subf %131, %145 : vector<8x32xf32>
    %cst_53 = arith.constant 9.99999974E-6 : f32
    %147 = vector.broadcast %cst_53 : f32 to vector<8x1xf32>
    %148 = arith.addf %144, %147 : vector<8x1xf32>
    %149 = math.rsqrt %148 : vector<8x1xf32>
    %150 = vector.broadcast %149 : vector<8x1xf32> to vector<8x32xf32>
    %151 = arith.mulf %146, %150 : vector<8x32xf32>
    %152 = vector.broadcast %132 : vector<1x32xf32> to vector<8x32xf32>
    %153 = arith.mulf %151, %152 : vector<8x32xf32>
    %154 = vector.broadcast %133 : vector<1x32xf32> to vector<8x32xf32>
    %155 = arith.addf %153, %154 : vector<8x32xf32>
    %156 = arith.truncf %155 : vector<8x32xf32> to vector<8x32xbf16>
    %c0_54 = arith.constant 0 : index
    %c0_55 = arith.constant 0 : index
    %157 = vector.load %arg12[%c0_54, %c0_55] : memref<32x128xbf16, #tpu.memory_space<vmem>>, vector<32x128xbf16>
    %cst_56 = arith.constant dense<0.000000e+00> : vector<8x128xf32>
    %158 = tpu.matmul %156, %157, %cst_56 {dimension_numbers = #tpu.dot_dimension_numbers<[1], [0], [0], [1], [0, 0, 1, 1], [], []>} : vector<8x32xbf16>, vector<32x128xbf16>, vector<8x128xf32> -> vector<8x128xf32>
    %c0_57 = arith.constant 0 : index
    %c0_58 = arith.constant 0 : index
    %159 = vector.load %arg13[%c0_57, %c0_58] : memref<1x128xf32, #tpu.memory_space<vmem>>, vector<1x128xf32>
    %160 = vector.broadcast %159 : vector<1x128xf32> to vector<8x128xf32>
    %161 = arith.addf %158, %160 : vector<8x128xf32>
    %cst_59 = arith.constant 0.000000e+00 : f32
    %162 = vector.broadcast %cst_59 : f32 to vector<8x128xf32>
    %163 = arith.maximumf %161, %162 : vector<8x128xf32>
    %164 = arith.truncf %163 : vector<8x128xf32> to vector<8x128xbf16>
    %c0_60 = arith.constant 0 : index
    %c0_61 = arith.constant 0 : index
    %165 = vector.load %arg14[%c0_60, %c0_61] : memref<128x32xbf16, #tpu.memory_space<vmem>>, vector<128x32xbf16>
    %cst_62 = arith.constant dense<0.000000e+00> : vector<8x32xf32>
    %166 = tpu.matmul %164, %165, %cst_62 {dimension_numbers = #tpu.dot_dimension_numbers<[1], [0], [0], [1], [0, 0, 1, 1], [], []>} : vector<8x128xbf16>, vector<128x32xbf16>, vector<8x32xf32> -> vector<8x32xf32>
    %c0_63 = arith.constant 0 : index
    %c0_64 = arith.constant 0 : index
    %167 = vector.load %arg15[%c0_63, %c0_64] : memref<1x32xf32, #tpu.memory_space<vmem>>, vector<1x32xf32>
    %168 = vector.broadcast %167 : vector<1x32xf32> to vector<8x32xf32>
    %169 = arith.addf %166, %168 : vector<8x32xf32>
    %170 = arith.addf %131, %169 : vector<8x32xf32>
    %c0_65 = arith.constant 0 : index
    %c0_66 = arith.constant 0 : index
    %c0_67 = arith.constant 0 : index
    %171 = vector.load %arg16[%c0_65, %c0_66, %c0_67] : memref<1x8x32xf32, #tpu.memory_space<vmem>>, vector<1x8x32xf32>
    %172 = vector.shape_cast %171 : vector<1x8x32xf32> to vector<8x32xf32>
    %173 = vector.shape_cast %170 : vector<8x32xf32> to vector<1x8x32xf32>
    tpu.vector_store %arg16[%c0_65, %c0_66, %c0_67], %173 {strides = array<i32>} : memref<1x8x32xf32, #tpu.memory_space<vmem>>, vector<1x8x32xf32>,
    return
  }
  func.func @transform_0(%arg0: i32) -> (i32, i32, i32) {
    %c0_i32 = arith.constant 0 : i32
    %c0_i32_0 = arith.constant 0 : i32
    %c0_i32_1 = arith.constant 0 : i32
    return %arg0, %c0_i32, %c0_i32_0 : i32, i32, i32
  }
  func.func @transform_1(%arg0: i32) -> (i32, i32) {
    %c0_i32 = arith.constant 0 : i32
    %c0_i32_0 = arith.constant 0 : i32
    %c0_i32_1 = arith.constant 0 : i32
    return %c0_i32, %c0_i32_0 : i32, i32
  }
  func.func @transform_2(%arg0: i32) -> (i32, i32) {
    %c0_i32 = arith.constant 0 : i32
    %c0_i32_0 = arith.constant 0 : i32
    %c0_i32_1 = arith.constant 0 : i32
    return %c0_i32, %c0_i32_0 : i32, i32
  }
  func.func @transform_3(%arg0: i32) -> (i32, i32) {
    %c0_i32 = arith.constant 0 : i32
    %c0_i32_0 = arith.constant 0 : i32
    %c0_i32_1 = arith.constant 0 : i32
    return %c0_i32, %c0_i32_0 : i32, i32
  }
  func.func @transform_4(%arg0: i32) -> (i32, i32) {
    %c0_i32 = arith.constant 0 : i32
    %c0_i32_0 = arith.constant 0 : i32
    %c0_i32_1 = arith.constant 0 : i32
    return %c0_i32, %c0_i32_0 : i32, i32
  }
  func.func @transform_5(%arg0: i32) -> (i32, i32) {
    %c0_i32 = arith.constant 0 : i32
    %c0_i32_0 = arith.constant 0 : i32
    %c0_i32_1 = arith.constant 0 : i32
    return %c0_i32, %c0_i32_0 : i32, i32
  }
  func.func @transform_6(%arg0: i32) -> (i32, i32) {
    %c0_i32 = arith.constant 0 : i32
    %c0_i32_0 = arith.constant 0 : i32
    %c0_i32_1 = arith.constant 0 : i32
    return %c0_i32, %c0_i32_0 : i32, i32
  }
  func.func @transform_7(%arg0: i32) -> (i32, i32) {
    %c0_i32 = arith.constant 0 : i32
    %c0_i32_0 = arith.constant 0 : i32
    %c0_i32_1 = arith.constant 0 : i32
    return %c0_i32, %c0_i32_0 : i32, i32
  }
  func.func @transform_8(%arg0: i32) -> (i32, i32) {
    %c0_i32 = arith.constant 0 : i32
    %c0_i32_0 = arith.constant 0 : i32
    %c0_i32_1 = arith.constant 0 : i32
    return %c0_i32, %c0_i32_0 : i32, i32
  }
  func.func @transform_9(%arg0: i32) -> (i32, i32) {
    %c0_i32 = arith.constant 0 : i32
    %c0_i32_0 = arith.constant 0 : i32
    %c0_i32_1 = arith.constant 0 : i32
    return %c0_i32, %c0_i32_0 : i32, i32
  }
  func.func @transform_10(%arg0: i32) -> (i32, i32) {
    %c0_i32 = arith.constant 0 : i32
    %c0_i32_0 = arith.constant 0 : i32
    %c0_i32_1 = arith.constant 0 : i32
    return %c0_i32, %c0_i32_0 : i32, i32
  }
  func.func @transform_11(%arg0: i32) -> (i32, i32) {
    %c0_i32 = arith.constant 0 : i32
    %c0_i32_0 = arith.constant 0 : i32
    %c0_i32_1 = arith.constant 0 : i32
    return %c0_i32, %c0_i32_0 : i32, i32
  }
  func.func @transform_12(%arg0: i32) -> (i32, i32) {
    %c0_i32 = arith.constant 0 : i32
    %c0_i32_0 = arith.constant 0 : i32
    %c0_i32_1 = arith.constant 0 : i32
    return %c0_i32, %c0_i32_0 : i32, i32
  }
  func.func @transform_13(%arg0: i32) -> (i32, i32) {
    %c0_i32 = arith.constant 0 : i32
    %c0_i32_0 = arith.constant 0 : i32
    %c0_i32_1 = arith.constant 0 : i32
    return %c0_i32, %c0_i32_0 : i32, i32
  }
  func.func @transform_14(%arg0: i32) -> (i32, i32) {
    %c0_i32 = arith.constant 0 : i32
    %c0_i32_0 = arith.constant 0 : i32
    %c0_i32_1 = arith.constant 0 : i32
    return %c0_i32, %c0_i32_0 : i32, i32
  }
  func.func @transform_15(%arg0: i32) -> (i32, i32, i32) {
    %c0_i32 = arith.constant 0 : i32
    %c0_i32_0 = arith.constant 0 : i32
    %c0_i32_1 = arith.constant 0 : i32
    return %arg0, %c0_i32, %c0_i32_0 : i32, i32, i32
  }
}

module attributes {stable_mosaic.version = 11 : i64} {
  func.func @_block_kernel(%arg0: i32, %arg1: memref<1x8x32xf32, #tpu.memory_space<vmem>>, %arg2: memref<1x8x32xf32, #tpu.memory_space<vmem>>, %arg3: memref<1x32xf32, #tpu.memory_space<vmem>>, %arg4: memref<1x32xf32, #tpu.memory_space<vmem>>, %arg5: memref<32x32xbf16, #tpu.memory_space<vmem>>, %arg6: memref<1x32xf32, #tpu.memory_space<vmem>>, %arg7: memref<32x64xbf16, #tpu.memory_space<vmem>>, %arg8: memref<1x64xf32, #tpu.memory_space<vmem>>, %arg9: memref<32x32xbf16, #tpu.memory_space<vmem>>, %arg10: memref<1x32xf32, #tpu.memory_space<vmem>>, %arg11: memref<1x32xf32, #tpu.memory_space<vmem>>, %arg12: memref<1x32xf32, #tpu.memory_space<vmem>>, %arg13: memref<32x128xbf16, #tpu.memory_space<vmem>>, %arg14: memref<1x128xf32, #tpu.memory_space<vmem>>, %arg15: memref<128x32xbf16, #tpu.memory_space<vmem>>, %arg16: memref<1x32xf32, #tpu.memory_space<vmem>>, %arg17: memref<1x8x32xf32, #tpu.memory_space<vmem>>) attributes {dimension_semantics = [#tpu.dimension_semantics<parallel>], iteration_bounds = array<i64: 2>, scalar_prefetch = 0 : i64, scratch_operands = 0 : i64, tpu.core_type = #tpu.core_type<tc>, window_params = [{transform_indices = @transform_0, window_bounds = array<i64: 1, 8, 32>}, {transform_indices = @transform_1, window_bounds = array<i64: 1, 8, 32>}, {pipeline_mode = #tpu.pipeline_mode<synchronous>, transform_indices = @transform_2, window_bounds = array<i64: 1, 32>}, {pipeline_mode = #tpu.pipeline_mode<synchronous>, transform_indices = @transform_3, window_bounds = array<i64: 1, 32>}, {pipeline_mode = #tpu.pipeline_mode<synchronous>, transform_indices = @transform_4, window_bounds = array<i64: 32, 32>}, {pipeline_mode = #tpu.pipeline_mode<synchronous>, transform_indices = @transform_5, window_bounds = array<i64: 1, 32>}, {pipeline_mode = #tpu.pipeline_mode<synchronous>, transform_indices = @transform_6, window_bounds = array<i64: 32, 64>}, {pipeline_mode = #tpu.pipeline_mode<synchronous>, transform_indices = @transform_7, window_bounds = array<i64: 1, 64>}, {pipeline_mode = #tpu.pipeline_mode<synchronous>, transform_indices = @transform_8, window_bounds = array<i64: 32, 32>}, {pipeline_mode = #tpu.pipeline_mode<synchronous>, transform_indices = @transform_9, window_bounds = array<i64: 1, 32>}, {pipeline_mode = #tpu.pipeline_mode<synchronous>, transform_indices = @transform_10, window_bounds = array<i64: 1, 32>}, {pipeline_mode = #tpu.pipeline_mode<synchronous>, transform_indices = @transform_11, window_bounds = array<i64: 1, 32>}, {pipeline_mode = #tpu.pipeline_mode<synchronous>, transform_indices = @transform_12, window_bounds = array<i64: 32, 128>}, {pipeline_mode = #tpu.pipeline_mode<synchronous>, transform_indices = @transform_13, window_bounds = array<i64: 1, 128>}, {pipeline_mode = #tpu.pipeline_mode<synchronous>, transform_indices = @transform_14, window_bounds = array<i64: 128, 32>}, {pipeline_mode = #tpu.pipeline_mode<synchronous>, transform_indices = @transform_15, window_bounds = array<i64: 1, 32>}, {transform_indices = @transform_16, window_bounds = array<i64: 1, 8, 32>}]} {
    %c0 = arith.constant 0 : index
    %c0_0 = arith.constant 0 : index
    %c0_1 = arith.constant 0 : index
    %0 = vector.load %arg1[%c0, %c0_0, %c0_1] : memref<1x8x32xf32, #tpu.memory_space<vmem>>, vector<1x8x32xf32>
    %1 = vector.shape_cast %0 : vector<1x8x32xf32> to vector<8x32xf32>
    %c0_2 = arith.constant 0 : index
    %c0_3 = arith.constant 0 : index
    %2 = vector.load %arg3[%c0_2, %c0_3] : memref<1x32xf32, #tpu.memory_space<vmem>>, vector<1x32xf32>
    %c0_4 = arith.constant 0 : index
    %c0_5 = arith.constant 0 : index
    %3 = vector.load %arg4[%c0_4, %c0_5] : memref<1x32xf32, #tpu.memory_space<vmem>>, vector<1x32xf32>
    %cst = arith.constant dense<0.000000e+00> : vector<8xf32>
    %4 = vector.multi_reduction <add>, %1, %cst [1] : vector<8x32xf32> to vector<8xf32>
    %5 = vector.shape_cast %4 : vector<8xf32> to vector<8x1xf32>
    %cst_6 = arith.constant 3.200000e+01 : f32
    %6 = vector.broadcast %cst_6 : f32 to vector<8x1xf32>
    %7 = arith.divf %5, %6 : vector<8x1xf32>
    %8 = vector.broadcast %7 : vector<8x1xf32> to vector<8x32xf32>
    %9 = arith.subf %1, %8 : vector<8x32xf32>
    %10 = arith.mulf %9, %9 : vector<8x32xf32>
    %cst_7 = arith.constant dense<0.000000e+00> : vector<8xf32>
    %11 = vector.multi_reduction <add>, %10, %cst_7 [1] : vector<8x32xf32> to vector<8xf32>
    %12 = vector.shape_cast %11 : vector<8xf32> to vector<8x1xf32>
    %cst_8 = arith.constant 3.200000e+01 : f32
    %13 = vector.broadcast %cst_8 : f32 to vector<8x1xf32>
    %14 = arith.divf %12, %13 : vector<8x1xf32>
    %15 = vector.broadcast %7 : vector<8x1xf32> to vector<8x32xf32>
    %16 = arith.subf %1, %15 : vector<8x32xf32>
    %cst_9 = arith.constant 9.99999974E-6 : f32
    %17 = vector.broadcast %cst_9 : f32 to vector<8x1xf32>
    %18 = arith.addf %14, %17 : vector<8x1xf32>
    %19 = math.rsqrt %18 : vector<8x1xf32>
    %20 = vector.broadcast %19 : vector<8x1xf32> to vector<8x32xf32>
    %21 = arith.mulf %16, %20 : vector<8x32xf32>
    %22 = vector.broadcast %2 : vector<1x32xf32> to vector<8x32xf32>
    %23 = arith.mulf %21, %22 : vector<8x32xf32>
    %24 = vector.broadcast %3 : vector<1x32xf32> to vector<8x32xf32>
    %25 = arith.addf %23, %24 : vector<8x32xf32>
    %c0_10 = arith.constant 0 : index
    %c0_11 = arith.constant 0 : index
    %c0_12 = arith.constant 0 : index
    %26 = vector.load %arg2[%c0_10, %c0_11, %c0_12] : memref<1x8x32xf32, #tpu.memory_space<vmem>>, vector<1x8x32xf32>
    %27 = vector.shape_cast %26 : vector<1x8x32xf32> to vector<8x32xf32>
    %cst_13 = arith.constant dense<0.000000e+00> : vector<8xf32>
    %28 = vector.multi_reduction <add>, %27, %cst_13 [1] : vector<8x32xf32> to vector<8xf32>
    %29 = vector.shape_cast %28 : vector<8xf32> to vector<8x1xf32>
    %cst_14 = arith.constant 3.200000e+01 : f32
    %30 = vector.broadcast %cst_14 : f32 to vector<8x1xf32>
    %31 = arith.divf %29, %30 : vector<8x1xf32>
    %32 = vector.broadcast %31 : vector<8x1xf32> to vector<8x32xf32>
    %33 = arith.subf %27, %32 : vector<8x32xf32>
    %34 = arith.mulf %33, %33 : vector<8x32xf32>
    %cst_15 = arith.constant dense<0.000000e+00> : vector<8xf32>
    %35 = vector.multi_reduction <add>, %34, %cst_15 [1] : vector<8x32xf32> to vector<8xf32>
    %36 = vector.shape_cast %35 : vector<8xf32> to vector<8x1xf32>
    %cst_16 = arith.constant 3.200000e+01 : f32
    %37 = vector.broadcast %cst_16 : f32 to vector<8x1xf32>
    %38 = arith.divf %36, %37 : vector<8x1xf32>
    %39 = vector.broadcast %31 : vector<8x1xf32> to vector<8x32xf32>
    %40 = arith.subf %27, %39 : vector<8x32xf32>
    %cst_17 = arith.constant 9.99999974E-6 : f32
    %41 = vector.broadcast %cst_17 : f32 to vector<8x1xf32>
    %42 = arith.addf %38, %41 : vector<8x1xf32>
    %43 = math.rsqrt %42 : vector<8x1xf32>
    %44 = vector.broadcast %43 : vector<8x1xf32> to vector<8x32xf32>
    %45 = arith.mulf %40, %44 : vector<8x32xf32>
    %46 = vector.broadcast %2 : vector<1x32xf32> to vector<8x32xf32>
    %47 = arith.mulf %45, %46 : vector<8x32xf32>
    %48 = vector.broadcast %3 : vector<1x32xf32> to vector<8x32xf32>
    %49 = arith.addf %47, %48 : vector<8x32xf32>
    %50 = arith.truncf %25 : vector<8x32xf32> to vector<8x32xbf16>
    %c0_18 = arith.constant 0 : index
    %c0_19 = arith.constant 0 : index
    %51 = vector.load %arg5[%c0_18, %c0_19] : memref<32x32xbf16, #tpu.memory_space<vmem>>, vector<32x32xbf16>
    %cst_20 = arith.constant dense<0.000000e+00> : vector<8x32xf32>
    %52 = tpu.matmul %50, %51, %cst_20 {dimension_numbers = #tpu.dot_dimension_numbers<[1], [0], [0], [1], [0, 0, 1, 1], [], []>} : vector<8x32xbf16>, vector<32x32xbf16>, vector<8x32xf32> -> vector<8x32xf32>
    %c0_21 = arith.constant 0 : index
    %c0_22 = arith.constant 0 : index
    %53 = vector.load %arg6[%c0_21, %c0_22] : memref<1x32xf32, #tpu.memory_space<vmem>>, vector<1x32xf32>
    %54 = vector.broadcast %53 : vector<1x32xf32> to vector<8x32xf32>
    %55 = arith.addf %52, %54 : vector<8x32xf32>
    %56 = arith.truncf %49 : vector<8x32xf32> to vector<8x32xbf16>
    %c0_23 = arith.constant 0 : index
    %c0_24 = arith.constant 0 : index
    %57 = vector.load %arg7[%c0_23, %c0_24] : memref<32x64xbf16, #tpu.memory_space<vmem>>, vector<32x64xbf16>
    %cst_25 = arith.constant dense<0.000000e+00> : vector<8x64xf32>
    %58 = tpu.matmul %56, %57, %cst_25 {dimension_numbers = #tpu.dot_dimension_numbers<[1], [0], [0], [1], [0, 0, 1, 1], [], []>} : vector<8x32xbf16>, vector<32x64xbf16>, vector<8x64xf32> -> vector<8x64xf32>
    %c0_26 = arith.constant 0 : index
    %c0_27 = arith.constant 0 : index
    %59 = vector.load %arg8[%c0_26, %c0_27] : memref<1x64xf32, #tpu.memory_space<vmem>>, vector<1x64xf32>
    %60 = vector.broadcast %59 : vector<1x64xf32> to vector<8x64xf32>
    %61 = arith.addf %58, %60 : vector<8x64xf32>
    %62 = vector.extract_strided_slice %61 {offsets = [0, 0], sizes = [8, 32], strides = [1, 1]} : vector<8x64xf32> to vector<8x32xf32>
    %63 = vector.extract_strided_slice %61 {offsets = [0, 32], sizes = [8, 32], strides = [1, 1]} : vector<8x64xf32> to vector<8x32xf32>
    %64 = tpu.iota {dimensions = array<i32: 0>} : vector<8x8xi32>
    %65 = tpu.iota {dimensions = array<i32: 1>} : vector<8x8xi32>
    %66 = arith.cmpi sle, %65, %64 : vector<8x8xi32>
    %67 = vector.extract_strided_slice %55 {offsets = [0, 0], sizes = [8, 8], strides = [1, 1]} : vector<8x32xf32> to vector<8x8xf32>
    %68 = arith.truncf %67 : vector<8x8xf32> to vector<8x8xbf16>
    %69 = vector.extract_strided_slice %62 {offsets = [0, 0], sizes = [8, 8], strides = [1, 1]} : vector<8x32xf32> to vector<8x8xf32>
    %70 = arith.truncf %69 : vector<8x8xf32> to vector<8x8xbf16>
    %71 = vector.extract_strided_slice %63 {offsets = [0, 0], sizes = [8, 8], strides = [1, 1]} : vector<8x32xf32> to vector<8x8xf32>
    %72 = arith.truncf %71 : vector<8x8xf32> to vector<8x8xbf16>
    %cst_28 = arith.constant dense<0.000000e+00> : vector<8x8xf32>
    %73 = tpu.matmul %68, %70, %cst_28 {dimension_numbers = #tpu.dot_dimension_numbers<[1], [1], [0], [0], [0, 0, 1, 0], [], []>} : vector<8x8xbf16>, vector<8x8xbf16>, vector<8x8xf32> -> vector<8x8xf32>
    %cst_29 = arith.constant 0.353553385 : f32
    %74 = vector.broadcast %cst_29 : f32 to vector<8x8xf32>
    %75 = arith.mulf %73, %74 : vector<8x8xf32>
    %cst_30 = arith.constant -1.000000e+30 : f32
    %76 = vector.broadcast %cst_30 : f32 to vector<8x8xf32>
    %77 = arith.select %66, %75, %76 : vector<8x8xi1>, vector<8x8xf32>
    %cst_31 = arith.constant dense<0xFF800000> : vector<8xf32>
    %78 = vector.multi_reduction <maximumf>, %77, %cst_31 [1] : vector<8x8xf32> to vector<8xf32>
    %79 = vector.shape_cast %78 : vector<8xf32> to vector<8x1xf32>
    %80 = vector.broadcast %79 : vector<8x1xf32> to vector<8x8xf32>
    %81 = arith.subf %77, %80 : vector<8x8xf32>
    %82 = math.exp %81 : vector<8x8xf32>
    %cst_32 = arith.constant dense<0.000000e+00> : vector<8xf32>
    %83 = vector.multi_reduction <add>, %82, %cst_32 [1] : vector<8x8xf32> to vector<8xf32>
    %84 = vector.shape_cast %83 : vector<8xf32> to vector<8x1xf32>
    %85 = tpu.reciprocal %84 {approx = true} : vector<8x1xf32> -> vector<8x1xf32>
    %86 = vector.broadcast %85 : vector<8x1xf32> to vector<8x8xf32>
    %87 = arith.mulf %82, %86 : vector<8x8xf32>
    %88 = arith.truncf %87 : vector<8x8xf32> to vector<8x8xbf16>
    %cst_33 = arith.constant dense<0.000000e+00> : vector<8x8xf32>
    %89 = tpu.matmul %88, %72, %cst_33 {dimension_numbers = #tpu.dot_dimension_numbers<[1], [0], [0], [1], [0, 0, 1, 1], [], []>} : vector<8x8xbf16>, vector<8x8xbf16>, vector<8x8xf32> -> vector<8x8xf32>
    %90 = vector.extract_strided_slice %55 {offsets = [0, 8], sizes = [8, 8], strides = [1, 1]} : vector<8x32xf32> to vector<8x8xf32>
    %91 = arith.truncf %90 : vector<8x8xf32> to vector<8x8xbf16>
    %92 = vector.extract_strided_slice %62 {offsets = [0, 8], sizes = [8, 8], strides = [1, 1]} : vector<8x32xf32> to vector<8x8xf32>
    %93 = arith.truncf %92 : vector<8x8xf32> to vector<8x8xbf16>
    %94 = vector.extract_strided_slice %63 {offsets = [0, 8], sizes = [8, 8], strides = [1, 1]} : vector<8x32xf32> to vector<8x8xf32>
    %95 = arith.truncf %94 : vector<8x8xf32> to vector<8x8xbf16>
    %cst_34 = arith.constant dense<0.000000e+00> : vector<8x8xf32>
    %96 = tpu.matmul %91, %93, %cst_34 {dimension_numbers = #tpu.dot_dimension_numbers<[1], [1], [0], [0], [0, 0, 1, 0], [], []>} : vector<8x8xbf16>, vector<8x8xbf16>, vector<8x8xf32> -> vector<8x8xf32>
    %cst_35 = arith.constant 0.353553385 : f32
    %97 = vector.broadcast %cst_35 : f32 to vector<8x8xf32>
    %98 = arith.mulf %96, %97 : vector<8x8xf32>
    %cst_36 = arith.constant -1.000000e+30 : f32
    %99 = vector.broadcast %cst_36 : f32 to vector<8x8xf32>
    %100 = arith.select %66, %98, %99 : vector<8x8xi1>, vector<8x8xf32>
    %cst_37 = arith.constant dense<0xFF800000> : vector<8xf32>
    %101 = vector.multi_reduction <maximumf>, %100, %cst_37 [1] : vector<8x8xf32> to vector<8xf32>
    %102 = vector.shape_cast %101 : vector<8xf32> to vector<8x1xf32>
    %103 = vector.broadcast %102 : vector<8x1xf32> to vector<8x8xf32>
    %104 = arith.subf %100, %103 : vector<8x8xf32>
    %105 = math.exp %104 : vector<8x8xf32>
    %cst_38 = arith.constant dense<0.000000e+00> : vector<8xf32>
    %106 = vector.multi_reduction <add>, %105, %cst_38 [1] : vector<8x8xf32> to vector<8xf32>
    %107 = vector.shape_cast %106 : vector<8xf32> to vector<8x1xf32>
    %108 = tpu.reciprocal %107 {approx = true} : vector<8x1xf32> -> vector<8x1xf32>
    %109 = vector.broadcast %108 : vector<8x1xf32> to vector<8x8xf32>
    %110 = arith.mulf %105, %109 : vector<8x8xf32>
    %111 = arith.truncf %110 : vector<8x8xf32> to vector<8x8xbf16>
    %cst_39 = arith.constant dense<0.000000e+00> : vector<8x8xf32>
    %112 = tpu.matmul %111, %95, %cst_39 {dimension_numbers = #tpu.dot_dimension_numbers<[1], [0], [0], [1], [0, 0, 1, 1], [], []>} : vector<8x8xbf16>, vector<8x8xbf16>, vector<8x8xf32> -> vector<8x8xf32>
    %113 = vector.extract_strided_slice %55 {offsets = [0, 16], sizes = [8, 8], strides = [1, 1]} : vector<8x32xf32> to vector<8x8xf32>
    %114 = arith.truncf %113 : vector<8x8xf32> to vector<8x8xbf16>
    %115 = vector.extract_strided_slice %62 {offsets = [0, 16], sizes = [8, 8], strides = [1, 1]} : vector<8x32xf32> to vector<8x8xf32>
    %116 = arith.truncf %115 : vector<8x8xf32> to vector<8x8xbf16>
    %117 = vector.extract_strided_slice %63 {offsets = [0, 16], sizes = [8, 8], strides = [1, 1]} : vector<8x32xf32> to vector<8x8xf32>
    %118 = arith.truncf %117 : vector<8x8xf32> to vector<8x8xbf16>
    %cst_40 = arith.constant dense<0.000000e+00> : vector<8x8xf32>
    %119 = tpu.matmul %114, %116, %cst_40 {dimension_numbers = #tpu.dot_dimension_numbers<[1], [1], [0], [0], [0, 0, 1, 0], [], []>} : vector<8x8xbf16>, vector<8x8xbf16>, vector<8x8xf32> -> vector<8x8xf32>
    %cst_41 = arith.constant 0.353553385 : f32
    %120 = vector.broadcast %cst_41 : f32 to vector<8x8xf32>
    %121 = arith.mulf %119, %120 : vector<8x8xf32>
    %cst_42 = arith.constant -1.000000e+30 : f32
    %122 = vector.broadcast %cst_42 : f32 to vector<8x8xf32>
    %123 = arith.select %66, %121, %122 : vector<8x8xi1>, vector<8x8xf32>
    %cst_43 = arith.constant dense<0xFF800000> : vector<8xf32>
    %124 = vector.multi_reduction <maximumf>, %123, %cst_43 [1] : vector<8x8xf32> to vector<8xf32>
    %125 = vector.shape_cast %124 : vector<8xf32> to vector<8x1xf32>
    %126 = vector.broadcast %125 : vector<8x1xf32> to vector<8x8xf32>
    %127 = arith.subf %123, %126 : vector<8x8xf32>
    %128 = math.exp %127 : vector<8x8xf32>
    %cst_44 = arith.constant dense<0.000000e+00> : vector<8xf32>
    %129 = vector.multi_reduction <add>, %128, %cst_44 [1] : vector<8x8xf32> to vector<8xf32>
    %130 = vector.shape_cast %129 : vector<8xf32> to vector<8x1xf32>
    %131 = tpu.reciprocal %130 {approx = true} : vector<8x1xf32> -> vector<8x1xf32>
    %132 = vector.broadcast %131 : vector<8x1xf32> to vector<8x8xf32>
    %133 = arith.mulf %128, %132 : vector<8x8xf32>
    %134 = arith.truncf %133 : vector<8x8xf32> to vector<8x8xbf16>
    %cst_45 = arith.constant dense<0.000000e+00> : vector<8x8xf32>
    %135 = tpu.matmul %134, %118, %cst_45 {dimension_numbers = #tpu.dot_dimension_numbers<[1], [0], [0], [1], [0, 0, 1, 1], [], []>} : vector<8x8xbf16>, vector<8x8xbf16>, vector<8x8xf32> -> vector<8x8xf32>
    %136 = vector.extract_strided_slice %55 {offsets = [0, 24], sizes = [8, 8], strides = [1, 1]} : vector<8x32xf32> to vector<8x8xf32>
    %137 = arith.truncf %136 : vector<8x8xf32> to vector<8x8xbf16>
    %138 = vector.extract_strided_slice %62 {offsets = [0, 24], sizes = [8, 8], strides = [1, 1]} : vector<8x32xf32> to vector<8x8xf32>
    %139 = arith.truncf %138 : vector<8x8xf32> to vector<8x8xbf16>
    %140 = vector.extract_strided_slice %63 {offsets = [0, 24], sizes = [8, 8], strides = [1, 1]} : vector<8x32xf32> to vector<8x8xf32>
    %141 = arith.truncf %140 : vector<8x8xf32> to vector<8x8xbf16>
    %cst_46 = arith.constant dense<0.000000e+00> : vector<8x8xf32>
    %142 = tpu.matmul %137, %139, %cst_46 {dimension_numbers = #tpu.dot_dimension_numbers<[1], [1], [0], [0], [0, 0, 1, 0], [], []>} : vector<8x8xbf16>, vector<8x8xbf16>, vector<8x8xf32> -> vector<8x8xf32>
    %cst_47 = arith.constant 0.353553385 : f32
    %143 = vector.broadcast %cst_47 : f32 to vector<8x8xf32>
    %144 = arith.mulf %142, %143 : vector<8x8xf32>
    %cst_48 = arith.constant -1.000000e+30 : f32
    %145 = vector.broadcast %cst_48 : f32 to vector<8x8xf32>
    %146 = arith.select %66, %144, %145 : vector<8x8xi1>, vector<8x8xf32>
    %cst_49 = arith.constant dense<0xFF800000> : vector<8xf32>
    %147 = vector.multi_reduction <maximumf>, %146, %cst_49 [1] : vector<8x8xf32> to vector<8xf32>
    %148 = vector.shape_cast %147 : vector<8xf32> to vector<8x1xf32>
    %149 = vector.broadcast %148 : vector<8x1xf32> to vector<8x8xf32>
    %150 = arith.subf %146, %149 : vector<8x8xf32>
    %151 = math.exp %150 : vector<8x8xf32>
    %cst_50 = arith.constant dense<0.000000e+00> : vector<8xf32>
    %152 = vector.multi_reduction <add>, %151, %cst_50 [1] : vector<8x8xf32> to vector<8xf32>
    %153 = vector.shape_cast %152 : vector<8xf32> to vector<8x1xf32>
    %154 = tpu.reciprocal %153 {approx = true} : vector<8x1xf32> -> vector<8x1xf32>
    %155 = vector.broadcast %154 : vector<8x1xf32> to vector<8x8xf32>
    %156 = arith.mulf %151, %155 : vector<8x8xf32>
    %157 = arith.truncf %156 : vector<8x8xf32> to vector<8x8xbf16>
    %cst_51 = arith.constant dense<0.000000e+00> : vector<8x8xf32>
    %158 = tpu.matmul %157, %141, %cst_51 {dimension_numbers = #tpu.dot_dimension_numbers<[1], [0], [0], [1], [0, 0, 1, 1], [], []>} : vector<8x8xbf16>, vector<8x8xbf16>, vector<8x8xf32> -> vector<8x8xf32>
    %159 = tpu.concatenate %89, %112, %135, %158 in 1 : vector<8x8xf32>, vector<8x8xf32>, vector<8x8xf32>, vector<8x8xf32> -> vector<8x32xf32>
    %160 = arith.truncf %159 : vector<8x32xf32> to vector<8x32xbf16>
    %c0_52 = arith.constant 0 : index
    %c0_53 = arith.constant 0 : index
    %161 = vector.load %arg9[%c0_52, %c0_53] : memref<32x32xbf16, #tpu.memory_space<vmem>>, vector<32x32xbf16>
    %cst_54 = arith.constant dense<0.000000e+00> : vector<8x32xf32>
    %162 = tpu.matmul %160, %161, %cst_54 {dimension_numbers = #tpu.dot_dimension_numbers<[1], [0], [0], [1], [0, 0, 1, 1], [], []>} : vector<8x32xbf16>, vector<32x32xbf16>, vector<8x32xf32> -> vector<8x32xf32>
    %c0_55 = arith.constant 0 : index
    %c0_56 = arith.constant 0 : index
    %163 = vector.load %arg10[%c0_55, %c0_56] : memref<1x32xf32, #tpu.memory_space<vmem>>, vector<1x32xf32>
    %164 = vector.broadcast %163 : vector<1x32xf32> to vector<8x32xf32>
    %165 = arith.addf %162, %164 : vector<8x32xf32>
    %166 = arith.addf %1, %165 : vector<8x32xf32>
    %c0_57 = arith.constant 0 : index
    %c0_58 = arith.constant 0 : index
    %167 = vector.load %arg11[%c0_57, %c0_58] : memref<1x32xf32, #tpu.memory_space<vmem>>, vector<1x32xf32>
    %c0_59 = arith.constant 0 : index
    %c0_60 = arith.constant 0 : index
    %168 = vector.load %arg12[%c0_59, %c0_60] : memref<1x32xf32, #tpu.memory_space<vmem>>, vector<1x32xf32>
    %cst_61 = arith.constant dense<0.000000e+00> : vector<8xf32>
    %169 = vector.multi_reduction <add>, %166, %cst_61 [1] : vector<8x32xf32> to vector<8xf32>
    %170 = vector.shape_cast %169 : vector<8xf32> to vector<8x1xf32>
    %cst_62 = arith.constant 3.200000e+01 : f32
    %171 = vector.broadcast %cst_62 : f32 to vector<8x1xf32>
    %172 = arith.divf %170, %171 : vector<8x1xf32>
    %173 = vector.broadcast %172 : vector<8x1xf32> to vector<8x32xf32>
    %174 = arith.subf %166, %173 : vector<8x32xf32>
    %175 = arith.mulf %174, %174 : vector<8x32xf32>
    %cst_63 = arith.constant dense<0.000000e+00> : vector<8xf32>
    %176 = vector.multi_reduction <add>, %175, %cst_63 [1] : vector<8x32xf32> to vector<8xf32>
    %177 = vector.shape_cast %176 : vector<8xf32> to vector<8x1xf32>
    %cst_64 = arith.constant 3.200000e+01 : f32
    %178 = vector.broadcast %cst_64 : f32 to vector<8x1xf32>
    %179 = arith.divf %177, %178 : vector<8x1xf32>
    %180 = vector.broadcast %172 : vector<8x1xf32> to vector<8x32xf32>
    %181 = arith.subf %166, %180 : vector<8x32xf32>
    %cst_65 = arith.constant 9.99999974E-6 : f32
    %182 = vector.broadcast %cst_65 : f32 to vector<8x1xf32>
    %183 = arith.addf %179, %182 : vector<8x1xf32>
    %184 = math.rsqrt %183 : vector<8x1xf32>
    %185 = vector.broadcast %184 : vector<8x1xf32> to vector<8x32xf32>
    %186 = arith.mulf %181, %185 : vector<8x32xf32>
    %187 = vector.broadcast %167 : vector<1x32xf32> to vector<8x32xf32>
    %188 = arith.mulf %186, %187 : vector<8x32xf32>
    %189 = vector.broadcast %168 : vector<1x32xf32> to vector<8x32xf32>
    %190 = arith.addf %188, %189 : vector<8x32xf32>
    %191 = arith.truncf %190 : vector<8x32xf32> to vector<8x32xbf16>
    %c0_66 = arith.constant 0 : index
    %c0_67 = arith.constant 0 : index
    %192 = vector.load %arg13[%c0_66, %c0_67] : memref<32x128xbf16, #tpu.memory_space<vmem>>, vector<32x128xbf16>
    %cst_68 = arith.constant dense<0.000000e+00> : vector<8x128xf32>
    %193 = tpu.matmul %191, %192, %cst_68 {dimension_numbers = #tpu.dot_dimension_numbers<[1], [0], [0], [1], [0, 0, 1, 1], [], []>} : vector<8x32xbf16>, vector<32x128xbf16>, vector<8x128xf32> -> vector<8x128xf32>
    %c0_69 = arith.constant 0 : index
    %c0_70 = arith.constant 0 : index
    %194 = vector.load %arg14[%c0_69, %c0_70] : memref<1x128xf32, #tpu.memory_space<vmem>>, vector<1x128xf32>
    %195 = vector.broadcast %194 : vector<1x128xf32> to vector<8x128xf32>
    %196 = arith.addf %193, %195 : vector<8x128xf32>
    %cst_71 = arith.constant 0.000000e+00 : f32
    %197 = vector.broadcast %cst_71 : f32 to vector<8x128xf32>
    %198 = arith.maximumf %196, %197 : vector<8x128xf32>
    %199 = arith.truncf %198 : vector<8x128xf32> to vector<8x128xbf16>
    %c0_72 = arith.constant 0 : index
    %c0_73 = arith.constant 0 : index
    %200 = vector.load %arg15[%c0_72, %c0_73] : memref<128x32xbf16, #tpu.memory_space<vmem>>, vector<128x32xbf16>
    %cst_74 = arith.constant dense<0.000000e+00> : vector<8x32xf32>
    %201 = tpu.matmul %199, %200, %cst_74 {dimension_numbers = #tpu.dot_dimension_numbers<[1], [0], [0], [1], [0, 0, 1, 1], [], []>} : vector<8x128xbf16>, vector<128x32xbf16>, vector<8x32xf32> -> vector<8x32xf32>
    %c0_75 = arith.constant 0 : index
    %c0_76 = arith.constant 0 : index
    %202 = vector.load %arg16[%c0_75, %c0_76] : memref<1x32xf32, #tpu.memory_space<vmem>>, vector<1x32xf32>
    %203 = vector.broadcast %202 : vector<1x32xf32> to vector<8x32xf32>
    %204 = arith.addf %201, %203 : vector<8x32xf32>
    %205 = arith.addf %166, %204 : vector<8x32xf32>
    %c0_77 = arith.constant 0 : index
    %c0_78 = arith.constant 0 : index
    %c0_79 = arith.constant 0 : index
    %206 = vector.load %arg17[%c0_77, %c0_78, %c0_79] : memref<1x8x32xf32, #tpu.memory_space<vmem>>, vector<1x8x32xf32>
    %207 = vector.shape_cast %206 : vector<1x8x32xf32> to vector<8x32xf32>
    %208 = vector.shape_cast %205 : vector<8x32xf32> to vector<1x8x32xf32>
    tpu.vector_store %arg17[%c0_77, %c0_78, %c0_79], %208 {strides = array<i32>} : memref<1x8x32xf32, #tpu.memory_space<vmem>>, vector<1x8x32xf32>,
    return
  }
  func.func @transform_0(%arg0: i32) -> (i32, i32, i32) {
    %c0_i32 = arith.constant 0 : i32
    %c0_i32_0 = arith.constant 0 : i32
    %c0_i32_1 = arith.constant 0 : i32
    return %arg0, %c0_i32, %c0_i32_0 : i32, i32, i32
  }
  func.func @transform_1(%arg0: i32) -> (i32, i32, i32) {
    %c0_i32 = arith.constant 0 : i32
    %c0_i32_0 = arith.constant 0 : i32
    %c0_i32_1 = arith.constant 0 : i32
    return %arg0, %c0_i32, %c0_i32_0 : i32, i32, i32
  }
  func.func @transform_2(%arg0: i32) -> (i32, i32) {
    %c0_i32 = arith.constant 0 : i32
    %c0_i32_0 = arith.constant 0 : i32
    %c0_i32_1 = arith.constant 0 : i32
    return %c0_i32, %c0_i32_0 : i32, i32
  }
  func.func @transform_3(%arg0: i32) -> (i32, i32) {
    %c0_i32 = arith.constant 0 : i32
    %c0_i32_0 = arith.constant 0 : i32
    %c0_i32_1 = arith.constant 0 : i32
    return %c0_i32, %c0_i32_0 : i32, i32
  }
  func.func @transform_4(%arg0: i32) -> (i32, i32) {
    %c0_i32 = arith.constant 0 : i32
    %c0_i32_0 = arith.constant 0 : i32
    %c0_i32_1 = arith.constant 0 : i32
    return %c0_i32, %c0_i32_0 : i32, i32
  }
  func.func @transform_5(%arg0: i32) -> (i32, i32) {
    %c0_i32 = arith.constant 0 : i32
    %c0_i32_0 = arith.constant 0 : i32
    %c0_i32_1 = arith.constant 0 : i32
    return %c0_i32, %c0_i32_0 : i32, i32
  }
  func.func @transform_6(%arg0: i32) -> (i32, i32) {
    %c0_i32 = arith.constant 0 : i32
    %c0_i32_0 = arith.constant 0 : i32
    %c0_i32_1 = arith.constant 0 : i32
    return %c0_i32, %c0_i32_0 : i32, i32
  }
  func.func @transform_7(%arg0: i32) -> (i32, i32) {
    %c0_i32 = arith.constant 0 : i32
    %c0_i32_0 = arith.constant 0 : i32
    %c0_i32_1 = arith.constant 0 : i32
    return %c0_i32, %c0_i32_0 : i32, i32
  }
  func.func @transform_8(%arg0: i32) -> (i32, i32) {
    %c0_i32 = arith.constant 0 : i32
    %c0_i32_0 = arith.constant 0 : i32
    %c0_i32_1 = arith.constant 0 : i32
    return %c0_i32, %c0_i32_0 : i32, i32
  }
  func.func @transform_9(%arg0: i32) -> (i32, i32) {
    %c0_i32 = arith.constant 0 : i32
    %c0_i32_0 = arith.constant 0 : i32
    %c0_i32_1 = arith.constant 0 : i32
    return %c0_i32, %c0_i32_0 : i32, i32
  }
  func.func @transform_10(%arg0: i32) -> (i32, i32) {
    %c0_i32 = arith.constant 0 : i32
    %c0_i32_0 = arith.constant 0 : i32
    %c0_i32_1 = arith.constant 0 : i32
    return %c0_i32, %c0_i32_0 : i32, i32
  }
  func.func @transform_11(%arg0: i32) -> (i32, i32) {
    %c0_i32 = arith.constant 0 : i32
    %c0_i32_0 = arith.constant 0 : i32
    %c0_i32_1 = arith.constant 0 : i32
    return %c0_i32, %c0_i32_0 : i32, i32
  }
  func.func @transform_12(%arg0: i32) -> (i32, i32) {
    %c0_i32 = arith.constant 0 : i32
    %c0_i32_0 = arith.constant 0 : i32
    %c0_i32_1 = arith.constant 0 : i32
    return %c0_i32, %c0_i32_0 : i32, i32
  }
  func.func @transform_13(%arg0: i32) -> (i32, i32) {
    %c0_i32 = arith.constant 0 : i32
    %c0_i32_0 = arith.constant 0 : i32
    %c0_i32_1 = arith.constant 0 : i32
    return %c0_i32, %c0_i32_0 : i32, i32
  }
  func.func @transform_14(%arg0: i32) -> (i32, i32) {
    %c0_i32 = arith.constant 0 : i32
    %c0_i32_0 = arith.constant 0 : i32
    %c0_i32_1 = arith.constant 0 : i32
    return %c0_i32, %c0_i32_0 : i32, i32
  }
  func.func @transform_15(%arg0: i32) -> (i32, i32) {
    %c0_i32 = arith.constant 0 : i32
    %c0_i32_0 = arith.constant 0 : i32
    %c0_i32_1 = arith.constant 0 : i32
    return %c0_i32, %c0_i32_0 : i32, i32
  }
  func.func @transform_16(%arg0: i32) -> (i32, i32, i32) {
    %c0_i32 = arith.constant 0 : i32
    %c0_i32_0 = arith.constant 0 : i32
    %c0_i32_1 = arith.constant 0 : i32
    return %arg0, %c0_i32, %c0_i32_0 : i32, i32, i32
  }
}

</mosaic_0001>

<bundles_post_ra>
// kernel: language_model_forward.9
= control target key start
LH: loop header
LB: loop body
LE: loop exit
PB: predicated region body
PF: predicated region fallthrough
CT: control target
= control target key end

     0   :  { %13 = vsyncpa [#allocation3], 0  ;;  %s947_s0 = inlined_call_operand.vmem [shape: f32[16,32], index: 0, kind: input, shape index: {}]   ;;  %s948_s1 = inlined_call_operand.vmem [shape: s32[16,1], index: 1, kind: input, shape index: {}]   ;;  %s949_s2 = inlined_call_operand.vmem [shape: f32[1,32], index: 2, kind: input, shape index: {}]   ;;  %s950_s3 = inlined_call_operand.vmem [shape: f32[1,32], index: 3, kind: input, shape index: {}]   ;;  %s951_s4 = inlined_call_operand.vmem [shape: bf16[32,64], index: 4, kind: input, shape index: {}]   ;;  %s952_s5 = inlined_call_operand.vmem [shape: f32[1,64], index: 5, kind: input, shape index: {}]   ;;  %s953_s6 = inlined_call_operand.hbm [shape: f32[16,64], index: 6, kind: output, shape index: {0}]   ;;  %s954_s7 = inlined_call_operand.hbm [shape: f32[1,1], index: 7, kind: output, shape index: {1}]  }
   0x1   :  { %15 = vsyncpa [#allocation3 + $0x1], 0 }
   0x2   :  { %16 = vsyncpa [#allocation5], 0  ;;  %s779_s24 = smov 0   ;;  %s781_s25 = smov 0  }
   0x3   :  { %s783_s26 = smov 0   ;;  %s785_s27 = smov 0  }
   0x4 LB: > { %s800_s28 = sadd.s32 4294967295, %s731_s27   ;;  %s546_s29 = sadd.s32 4294967294, %s731_s27   ;;  %s731_s27 = sphi %s785_s27, %s960_s27   ;;  %s727_s26 = sphi %s783_s26, %s959_s26   ;;  %s723_s25 = sphi %s781_s25, %s958_s25   ;;  %s719_s24 = sphi %s779_s24, %s957_s24  }
   0x5   : > { %s804_s30 = sadd.s32 1, %s731_s27   ;;  %s165_s8 = sadd.s32 1, %s727_s26 }
   0x6   : > { %s162_s9 = ssub.s32 %s731_s27, %s804_s30  ;;  %p175_p0 = scmp.ne.s32.totalorder %s727_s26, %s723_s25 }
   0x7   : > { %p163_p1 = scmp.eq.s32.totalorder %s162_s9, 0  ;;  %p176_p2 = scmp.eq.s32.totalorder %s800_s28, 1 }
   0x8   : > { %p181_p3 = scmp.ne.s32.totalorder %s723_s25, %s719_s24  ;;  %p182_p4 = scmp.eq.s32.totalorder %s546_s29, 1 }
   0x9   : > { %s815_s10 = scalar_select %p163_p1, %s727_s26, %s165_s8  }
   0xa   : > { %p819_p5 = por %p176_p2, %p175_p0  ;;  %p823_p6 = por %p182_p4, %p181_p3 }
   0xb   : > { %p549_p7 = scmp.ge.s32.totalorder %s731_s27, 1  ;;  %p247_p8 = scmp.lt.s32.totalorder %s731_s27, 3 }
   0xd   : > { %p248_p9 = pnand %p549_p7, %p247_p8 }
   0xe   : > { %p282_p10 = scmp.lt.s32.totalorder (!%p248_p9), %s800_s28, 1  ;;  %vm294_vm0 = vcmask (!%p248_p9), 261120   ;;  %v631_v7 = vld [vmem:[%s951_s4] sm:$0xff] (!%p248_p9)   ;;  %v733_v8 = vmov (!%p248_p9), 0.0   ;;  %vm734_vm1 = vmmov (!%p248_p9), 0   ;;  %v632_v9 = vld [vmem:[%s951_s4 + $0x8] sm:$0xff] (!%p248_p9)   ;;  %v404_v32 = vlaneseq (!%p248_p9) }
   0xf   : > { %251 = sbr.rel (%p248_p9) target bundleno = 1129 (0x469), region = 44  ;;  %569 = vmatprep.subr.bf16.mxu0 (!%p248_p9), %v733_v8  ;;  %573 = vmatprep.mubr.msk.bf16.mxu0 (!%p248_p9), %vm734_vm1, %v733_v8  ;;  %v553_v14 = vld [vmem:[%s949_s2] ss:$0 sm:$0xff] (!%p248_p9)  ;;  %v735_v20 = vmov (!%p248_p9), 0   ;;  %s277_s9 = sand.u32 (!%p248_p9), 1, %s723_s25   ;;  %vm390_vm2 = vcmask (!%p248_p9), 523264  }
  0x10   : > { %570 = vmatpush3.bf16.msra.mxu0 (!%p248_p9), %v631_v7  ;;  %v554_v16 = vld [vmem:[%s950_s3] ss:$0 sm:$0xff] (!%p248_p9)  ;;  %629 = vset.pattern.permute.xlu1 (!%p248_p9), %v735_v20  ;;  %s857_s15 = sshll.u32 (!%p248_p9), %s277_s9, 3  ;;  %v405_v33 = vand.u32 (!%p248_p9), 127, %v404_v32  ;;  %vm416_vm4 = vcmask (!%p248_p9), 7168   ;;  %p559_p11 = scmp.ne.s32.totalorder (!%p248_p9), %s800_s28, 0 }
  0x11   : > { %571 = vmatprep.subr.bf16.mxu0 (!%p248_p9), %v733_v8  ;;  %630 = vset.pattern.permute.xlu0 (!%p248_p9), %v735_v20  ;;  %v555_v21 = vld [vmem:[%s952_s5] ss:$0 sm:$0xff] (!%p248_p9)  ;;  %s279_s18 = scalar_lea.vmem (!%p248_p9), [#allocation2], %s857_s15 }
  0x14   : > { %572 = vmatpush3.bf16.msra.mxu0 (!%p248_p9), %v632_v9 }
  0x16   : > { %s831_s13 = scalar_select %p282_p10, %s800_s28, 1 }
  0x17   : > { %vm432_vm5 = vcmask (!%p559_p11), 0   ;;  %v736_v53 = vmov (!%p559_p11), 0.0  }
  0x18   : > { %s551_s14 = sshll.u32 %s831_s13, 3  ;;  %433 = vst.msk [vmem:[#allocation4] sm:$0x1] (!%p559_p11), %vm432_vm5, %v736_v53 }
  0x19   : > { %s285_s17 = scalar_lea.vmem %s947_s0, %s551_s14  ;;  %s289_s21 = scalar_lea.vmem %s948_s1, %s551_s14 }
  0x1a   : > { %v291_v0 = vld [vmem:[%s285_s17] sm:$0xff] }
  0x1b   : > { %v295_v1 = vsel %vm294_vm0, %v291_v0, 0.0  ;;  %v406_v28 = vld [vmem:[%s289_s21] sm:$0xff] }
  0x1c   : > { %296 = vadd.xlane.f32.xlu0 %v295_v1 }
  0xa9   : > { %v297_v2 = vpop.xlane.xlu0 %296 }
  0xaa   : > { %v299_v3 = vmul.f32 0.03125, %v297_v2 }
  0xac   : > { %v300_v4 = vsub.f32 %v291_v0, %v299_v3 }
  0xae   : > { %v301_v5 = vmul.f32 %v300_v4, %v300_v4 }
  0xb0   : > { %v302_v6 = vsel %vm294_vm0, %v301_v5, 0.0 }
  0xb1   : > { %303 = vadd.xlane.f32.xlu0 %v302_v6 }
 0x13e   : > { %v304_v10 = vpop.xlane.xlu0 %303 }
 0x13f   : > { %v305_v11 = vmul.f32 0.03125, %v304_v10 }
 0x141   : > { %v306_v12 = vadd.f32 1e-05, %v305_v11 }
 0x143   : > { %633 = vrsqrt.f32 %v306_v12 }
 0x14d   : > { %v634_v13 = vpop.eup %633 }
 0x14e   : > { %v308_v15 = vmul.f32 %v634_v13, %v300_v4 }
 0x150   : > { %v315_v17 = vmul.f32 %v553_v14, %v308_v15 }
 0x152   : > { %v322_v18 = vadd.f32 %v554_v16, %v315_v17 }
 0x154   : > { %v323_v19 = vpack.c.bf16 %v322_v18, %v322_v18 }
 0x156   : > { %574 = vmatmul.mubr.msk.bf16.vlgmr.msra.gmra.mrb[0].mxu0 %vm294_vm0, %v323_v19 }
 0x229   : > { %v384_v22 = vpop.f32.mrb[0].mxu0 }
 0x22a   : > { %v385_v23 = vadd.f32 %v555_v21, %v384_v22  ;;  %v575_v24 = vpop.f32.mrb[1].mxu0 }
 0x22b   : > { %v387_v25 = vpop.f32.mrb[2].mxu0 }
 0x22c   : > { %v576_v26 = vpop.f32.mrb[3].mxu0  ;;  %v392_v27 = vsel %vm390_vm2, %v385_v23, -inf  ;;  %391 = vst.msk [vmem:[%s279_s18] sm:$0xff] %vm390_vm2, %v385_v23 }
 0x22d   : > { %393 = vmax.xlane.f32.xlu1 %v392_v27 }
 0x23e   : > { %408 = vperm.xlu1 %629, %v406_v28  }
 0x2ba   : > { %v394_v29 = vpop.xlane.xlu1 %393 }
 0x2bb   : > { %v395_v30 = vsub.f32 %v385_v23, %v394_v29 }
 0x2bd   : > { %v396_v31 = vmul.f32 1.442695, %v395_v30 }
 0x2be   : > { %v409_v34 = vpop.permute.xlu1 %408 }
 0x2bf   : > { %635 = vpow2.f32 %v396_v31  ;;  %vm410_vm3 = vcmp.eq.s32.totalorder %v405_v33, %v409_v34 }
 0x2c0   : > { %v411_v37 = vsel %vm410_vm3, %v385_v23, 0.0 }
 0x2c1   : > { %v412_v38 = vsel %vm390_vm2, %v411_v37, 0.0 }
 0x2c9   : > { %v636_v35 = vpop.eup %635 }
 0x2ca   : > { %v398_v36 = vsel %vm390_vm2, %v636_v35, 0.0 }
 0x2cb   : > { %399 = vadd.xlane.f32.xlu0 %v398_v36 }
 0x2cf   : > { %413 = vadd.xlane.f32.xlu0 %v412_v38 }
 0x358   : > { %v400_v39 = vpop.xlane.xlu0 %399 }
 0x359   : > { %637 = vlog2.f32 %v400_v39 }
 0x35c   : > { %v414_v43 = vpop.xlane.xlu0 %413 }
 0x363   : > { %v638_v40 = vpop.eup %637 }
 0x364   : > { %v402_v41 = vmul.f32 0.6931472, %v638_v40 }
 0x366   : > { %v403_v42 = vadd.f32 %v402_v41, %v394_v29 }
 0x368   : > { %v415_v44 = vsub.f32 %v403_v42, %v414_v43 }
 0x36a   : > { %v417_v45 = vsel %vm416_vm4, %v415_v44, 0.0 }
 0x36b   : > { %418 = vadd.xlane.f32.xlu0 %v417_v45 }
 0x3f8   : > { %v419_v46 = vpop.xlane.xlu0 %418 }
 0x3f9   : > { %v420_v47 = vrot.slane %v419_v46, 4 }
 0x3fb   : > { %v421_v48 = vadd.f32 %v420_v47, %v419_v46 }
 0x3fd   : > { %v422_v49 = vrot.slane %v421_v48, 2 }
 0x3ff   : > { %v423_v50 = vadd.f32 %v422_v49, %v421_v48 }
 0x401   : > { %v424_v51 = vrot.slane %v423_v50, 1 }
 0x403   : > { %v425_v52 = vadd.f32 %v424_v51, %v423_v50 }
 0x405   : > { %577 = vpush %v425_v52 }
 0x431   : > { %431 = sbr.rel (%p559_p11) target bundleno = 1080 (0x438), region = 48 }
 0x436   : > { %s578_s13 = spop %577 }
 0x437   : > { %s427_s14 = smul.f32 0.0625, %s578_s13 }
 0x438 PF: > { %v434_v54 = vld [vmem:[#allocation4] sm:$0x1]  ;;  %vm437_vm6 = vcmask 0   ;;  %s561_s22 = sshll.u32 %s800_s28, 7  ;;  %s453_s16 = sshll.u32 %s279_s18, 4  ;;  %s883_s16 = int_to_ptr.vmem [resolvable:$true] %s453_s16 }
 0x439   : > { %v435_v55 = vstv %s427_s14  ;;  %s879_s8 = scalar_lea.hbm %s953_s6, %s561_s22  ;;  %s440_s17 = scalar_lea.sflag [#allocation3], %s277_s9 }
 0x43a   : > { %v436_v56 = vadd.f32 %v435_v55, %v434_v54  ;;  %s639_s19 = scalar_lea.vmem %s883_s16, 128  ;;  %s737_s20 = smov [#allocation2]  }
 0x43b   : > { %p640_p12 = scmp.ne.s32.totalorder %s883_s16, %s639_s19  ;;  %s643_s21 = sshll.u32 %s737_s20, 4  ;;  %s644_s21 = int_to_ptr.vmem [resolvable:$false] %s643_s21 }
 0x43c   : > { %438 = vst.msk [vmem:[#allocation4] sm:$0x1] %vm437_vm6, %v436_v56  ;;  %s645_s13 = scalar_lea.vmem %s644_s21, 256  ;;  %p646_p1 = scmp.lt.s32.totalorder %s883_s16, %s644_s21 }
 0x43d   : > { %p641_p13 = pnand %p640_p12, %p819_p5  ;;  %p647_p3 = scmp.lt.s32.totalorder %s645_s13, %s639_s19 }
 0x43f   : > { %p642_p0 = pneg %p641_p13  ;;  %p648_p4 = por %p647_p3, %p646_p1 }
 0x441   : > { %p649_p7 = pnand %p648_p4, %p642_p0 }
 0x443   : > { %652 = shalt.err (!%p649_p7)
}
 0x444   : > { %s653_s9 = scalar_lea.hbm %s879_s8, 128  ;;  %s657_s14 = scalar_lea.hbm %s953_s6, 256 }
 0x445   : > { %p654_p8 = scmp.ne.s32.totalorder %s879_s8, %s653_s9  ;;  %p658_p11 = scmp.lt.u32.totalorder %s879_s8, %s953_s6 }
 0x446   : > { %p659_p12 = scmp.lt.u32.totalorder %s657_s14, %s653_s9  ;;  %p661_p0 = scmp.lt.u32.totalorder %s653_s9, %s879_s8 }
 0x447   : > { %p655_p9 = pnand %p654_p8, %p819_p5 }
 0x448   : > { %p660_p13 = por %p659_p12, %p658_p11 }
 0x449   : > { %p656_p10 = pneg %p655_p9 }
 0x44a   : > { %p662_p1 = por %p661_p0, %p660_p13 }
 0x44c   : > { %p663_p3 = pnand %p662_p1, %p656_p10 }
 0x44e   : > { %666 = shalt.err (!%p663_p3)
}
 0x44f   : > { %579 = dma.vmem_to_hbm [thread:$0]  (%p819_p5), %s883_s16, 128, %s879_s8, %s440_s17  }
 0x450   : > { %s738_s29 = smov [#allocation4]  }
 0x451   : > { %s464_s19 = sshll.u32 %s738_s29, 4  ;;  %s465_s19 = int_to_ptr.vmem [resolvable:$true] %s464_s19 }
 0x452   : > { %s667_s20 = scalar_lea.vmem %s465_s19, 16  ;;  %s673_s21 = scalar_lea.vmem %s465_s19, 32 }
 0x453   : > { %p668_p4 = scmp.ne.s32.totalorder %s465_s19, %s667_s20  ;;  %p674_p9 = scmp.lt.s32.totalorder %s465_s19, %s465_s19 }
 0x454   : > { %p675_p11 = scmp.lt.s32.totalorder %s673_s21, %s667_s20 }
 0x455   : > { %p669_p7 = pnand %p668_p4, %p176_p2 }
 0x456   : > { %p676_p12 = por %p675_p11, %p674_p9 }
 0x457   : > { %p670_p8 = pneg %p669_p7 }
 0x459   : > { %p677_p10 = pnand %p676_p12, %p670_p8 }
 0x45b   : > { %680 = shalt.err (!%p677_p10)
}
 0x45c   : > { %s681_s9 = scalar_lea.hbm %s954_s7, 16 }
 0x45d   : > { %p682_p5 = scmp.ne.s32.totalorder %s954_s7, %s681_s9  ;;  %p687_p1 = scmp.lt.u32.totalorder %s681_s9, %s954_s7 }
 0x45f   : > { %p683_p13 = pnand %p682_p5, %p176_p2 }
 0x461   : > { %p684_p0 = pneg %p683_p13 }
 0x463   : > { %p689_p3 = pnand %p687_p1, %p684_p0 }
 0x465   : > { %692 = shalt.err (!%p689_p3)
}
 0x466   : > { %581 = dma.vmem_to_hbm [thread:$0]  (%p176_p2), %s465_s19, 16, %s954_s7, [#allocation5]  }
 0x467   : > { %710 = dma.done.wait (%p176_p2), [#allocation5], 16  }
 0x468   : > { %712 = vsyncadd (%p176_p2), [#allocation5], 4294967280 }
 0x469 PF: > { %p591_p4 = scmp.ge.s32.totalorder %s731_s27, 2  ;;  %s480_s22 = sand.u32 1, %s719_s24  }
 0x46a   : > { %s481_s23 = scalar_lea.sflag [#allocation3], %s480_s22 }
 0x46b   : > { %p586_p7 = pnand %p591_p4, %p823_p6 }
 0x46d   : > { %714 = dma.done.wait (!%p586_p7), %s481_s23, 128  }
 0x46e   : > { %716 = vsyncadd (!%p586_p7), %s481_s23, 4294967168  ;;  %p19_p8 = scmp.ge.s32.totalorder %s804_s30, 4   ;;  %s957_s24 = smov %s723_s25 }
 0x46f   : > { %s958_s25 = smov %s727_s26  ;;  %s959_s26 = smov %s815_s10 }
 0x470   : > { %s960_s27 = smov %s804_s30  ;;  %21 = sbr.rel (!%p19_p8) target bundleno = 4 (0x4), region = 94 }
 0x477   :  { %486 = vsyncpa [#allocation3], 1 }
 0x478   :  { %488 = vsyncpa [#allocation3 + $0x1], 1 }
 0x479   :  { %489 = vsyncpa [#allocation5], 1 }

// kernel: language_model_forward.5
= control target key start
LH: loop header
LB: loop body
LE: loop exit
PB: predicated region body
PF: predicated region fallthrough
CT: control target
= control target key end

     0   :  { %s1787_s18 = smov 0   ;;  %s1990_s0 = inlined_call_operand.vmem [shape: f32[2,8,32], index: 0, kind: input, shape index: {}]   ;;  %s1991_s1 = inlined_call_operand.vmem [shape: f32[1,32], index: 1, kind: input, shape index: {}]   ;;  %s1992_s2 = inlined_call_operand.vmem [shape: f32[1,32], index: 2, kind: input, shape index: {}]   ;;  %s1993_s3 = inlined_call_operand.vmem [shape: bf16[32,32], index: 3, kind: input, shape index: {}]   ;;  %s1994_s4 = inlined_call_operand.vmem [shape: f32[1,32], index: 4, kind: input, shape index: {}]   ;;  %s1995_s5 = inlined_call_operand.vmem [shape: bf16[32,64], index: 5, kind: input, shape index: {}]   ;;  %s1996_s6 = inlined_call_operand.vmem [shape: f32[1,64], index: 6, kind: input, shape index: {}]   ;;  %s1997_s7 = inlined_call_operand.vmem [shape: bf16[32,32], index: 7, kind: input, shape index: {}]   ;;  %s1998_s8 = inlined_call_operand.vmem [shape: f32[1,32], index: 8, kind: input, shape index: {}]   ;;  %s1999_s9 = inlined_call_operand.vmem [shape: f32[1,32], index: 9, kind: input, shape index: {}]   ;;  %s2000_s10 = inlined_call_operand.vmem [shape: f32[1,32], index: 10, kind: input, shape index: {}]   ;;  %s2001_s11 = inlined_call_operand.vmem [shape: bf16[32,128], index: 11, kind: input, shape index: {}]   ;;  %s2002_s12 = inlined_call_operand.vmem [shape: f32[1,128], index: 12, kind: input, shape index: {}]   ;;  %s2003_s13 = inlined_call_operand.vmem [shape: bf16[128,32], index: 13, kind: input, shape index: {}]   ;;  %s2004_s14 = inlined_call_operand.vmem [shape: f32[1,32], index: 14, kind: input, shape index: {}]   ;;  %s2005_s15 = inlined_call_operand.vmem [shape: f32[2,8,32], index: 15, kind: output, shape index: {}]  }
   0x1 LB: > { %s1448_s19 = sadd.s32 4294967295, %s1693_s18   ;;  %p1452_p0 = scmp.ge.s32.totalorder %s1693_s18, 1  ;;  %s1693_s18 = sphi %s1787_s18, %s25_s18  }
   0x2   : > { %p436_p1 = scmp.lt.s32.totalorder %s1693_s18, 3 }
   0x4   : > { %p437_p2 = pnand %p1452_p0, %p436_p1 }
   0x5   : > { %p482_p3 = scmp.lt.s32.totalorder (!%p437_p2), %s1448_s19, 1  ;;  %vm494_vm0 = vcmask (!%p437_p2), 261120   ;;  %v1651_v7 = vld [vmem:[%s1993_s3] sm:$0xff] (!%p437_p2)   ;;  %v1695_v8 = vmov (!%p437_p2), 0.0   ;;  %vm1696_vm1 = vmmov (!%p437_p2), 0   ;;  %v1652_v9 = vld [vmem:[%s1993_s3 + $0x8] sm:$0xff] (!%p437_p2)  }
   0x6   : > { %440 = sbr.rel (%p437_p2) target bundleno = 2559 (0x9ff), region = 80  ;;  %1531 = vmatprep.subr.bf16.mxu1 (!%p437_p2), %v1695_v8  ;;  %1535 = vmatprep.mubr.msk.bf16.mxu1 (!%p437_p2), %vm1696_vm1, %v1695_v8  ;;  %v1455_v14 = vld [vmem:[%s1991_s1] ss:$0 sm:$0xff] (!%p437_p2)  ;;  %v1654_v21 = vld [vmem:[%s1995_s5 + $0x8] sm:$0xff] (!%p437_p2)   ;;  %vm655_vm2 = vcmask (!%p437_p2), 64512   ;;  %s1697_s28 = smov (!%p437_p2), 112  }
   0x7   : > { %1532 = vmatpush3.bf16.msra.mxu1 (!%p437_p2), %v1651_v7  ;;  %1559 = vmatprep.subr.bf16.mxu0 (!%p437_p2), %v1695_v8  ;;  %v1456_v16 = vld [vmem:[%s1992_s2] ss:$0 sm:$0xff] (!%p437_p2)  ;;  %s1698_s29 = smov (!%p437_p2), 120   ;;  %s1699_s30 = smov (!%p437_p2), 104   ;;  %vm721_vm3 = vcmask (!%p437_p2), 1043456   ;;  %vm1112_vm4 = vcmask (!%p437_p2), 130048  }
   0x8   : > { %1533 = vmatprep.subr.bf16.mxu1 (!%p437_p2), %v1695_v8  ;;  %1561 = vmatprep.mubr.msk.bf16.mxu0 (!%p437_p2), %vm1696_vm1, %v1695_v8  ;;  %v1653_v19 = vld [vmem:[%s1995_s5] sm:$0xff] (!%p437_p2)   ;;  %s1700_s16 = smov (!%p437_p2), 88   ;;  %s1701_s17 = smov (!%p437_p2), 96   ;;  %vm1114_vm5 = vcmask (!%p437_p2), 195584  }
   0x9   : > { %v1461_v26 = vld [vmem:[%s1996_s6] ss:$0 sm:$0xff] (!%p437_p2)  ;;  %s1702_s21 = smov (!%p437_p2), 72   ;;  %s1703_s22 = smov (!%p437_p2), 80  }
   0xa   : > { %v1457_v27 = vld [vmem:[%s1994_s4] ss:$0 sm:$0xff] (!%p437_p2) }
   0xb   : > { %1534 = vmatpush3.bf16.msra.mxu1 (!%p437_p2), %v1652_v9 }
   0xc   : > { %1539 = vmatprep.subr.bf16.mxu1 (!%p437_p2), %v1695_v8 }
   0xd   : > { %s2007_s19 = smov (!%p482_p3, %s1448_s19), 1 }
   0xe   : > { %s1453_s20 = sshll.u32 %s2007_s19, 3 }
   0xf   : > { %s485_s23 = scalar_lea.vmem %s1990_s0, %s1453_s20  ;;  %s489_s26 = scalar_lea.vmem %s2005_s15, %s1453_s20 }
  0x10   : > { %v1803_v0 = vld [vmem:[%s485_s23] sm:$0xff]  ;;  %s1704_s23 = smov 8  }
  0x11   : > { %v495_v1 = vsel %vm494_vm0, %v1803_v0, 0.0 }
  0x12   : > { %496 = vadd.xlane.f32.xlu0 %v495_v1 }
  0x9f   : > { %v497_v2 = vpop.xlane.xlu0 %496 }
  0xa0   : > { %v499_v3 = vmul.f32 0.03125, %v497_v2 }
  0xa2   : > { %v500_v4 = vsub.f32 %v1803_v0, %v499_v3 }
  0xa4   : > { %v501_v5 = vmul.f32 %v500_v4, %v500_v4 }
  0xa6   : > { %v502_v6 = vsel %vm494_vm0, %v501_v5, 0.0 }
  0xa7   : > { %503 = vadd.xlane.f32.xlu0 %v502_v6 }
 0x134   : > { %v504_v10 = vpop.xlane.xlu0 %503 }
 0x135   : > { %v505_v11 = vmul.f32 0.03125, %v504_v10 }
 0x137   : > { %v506_v12 = vadd.f32 1e-05, %v505_v11 }
 0x139   : > { %1667 = vrsqrt.f32 %v506_v12 }
 0x143   : > { %v1668_v13 = vpop.eup %1667 }
 0x144   : > { %v508_v15 = vmul.f32 %v1668_v13, %v500_v4 }
 0x146   : > { %v515_v17 = vmul.f32 %v1455_v14, %v508_v15 }
 0x148   : > { %v522_v18 = vadd.f32 %v1456_v16, %v515_v17 }
 0x14a   : > { %v523_v20 = vpack.c.bf16 %v522_v18, %v522_v18 }
 0x14c   : > { %1536 = vmatmul.mubr.msk.bf16.vlgmr.msra.gmra.mrb[0].mxu1 %vm494_vm0, %v523_v20 }
 0x14d   : > { %1540 = vmatpush3.bf16.msra.mxu1 %v1653_v19  ;;  %1543 = vmatprep.mubr.msk.bf16.mxu1 %vm1696_vm1, %v1695_v8 }
 0x14e   : > { %1541 = vmatprep.subr.bf16.mxu1 %v1695_v8 }
 0x151   : > { %1542 = vmatpush3.bf16.msra.mxu1 %v1654_v21 }
 0x152   : > { %1547 = vmatprep.subr.bf16.mxu1 %v1695_v8 }
 0x154   : > { %1544 = vmatmul.mubr.msk.bf16.vlgmr.msra.gmra.mrb[4].mxu1 %vm494_vm0, %v523_v20 }
 0x155   : > { %1549 = vmatprep.mubr.msk.bf16.mxu1 %vm1696_vm1, %v1695_v8 }
 0x21f   : > { %v584_v22 = vpop.f32.mrb[0].mxu1 }
 0x220   : > { %v1537_v23 = vpop.f32.mrb[1].mxu1  ;;  %v585_v32 = vadd.f32 %v1457_v27, %v584_v22 }
 0x221   : > { %v587_v24 = vpop.f32.mrb[2].mxu1 }
 0x222   : > { %v1538_v25 = vpop.f32.mrb[3].mxu1  ;;  %v653_v36 = vpack.c.bf16 %v585_v32, %v585_v32 }
 0x227   : > { %v647_v28 = vpop.f32.mrb[4].mxu1 }
 0x228   : > { %v648_v29 = vadd.f32 %v1461_v26, %v647_v28  ;;  %v1545_v30 = vpop.f32.mrb[5].mxu1 }
 0x229   : > { %v650_v31 = vpop.f32.mrb[6].mxu1 }
 0x22a   : > { %v1849_v33 = vpack.c.bf16 %v648_v29, %v648_v29  ;;  %v1546_v34 = vpop.f32.mrb[7].mxu1 }
 0x22c   : > { %879 = vrot.lane.b32.xlu0 %v1849_v33, %s1697_s28  ;;  %768 = vrot.lane.b32.xlu1 %v1849_v33, %s1698_s29  ;;  %v660_v35 = vsel %vm655_vm2, %v1849_v33, 0 }
 0x22d   : > { %1548 = vmatpush3.bf16.xpose.msra.mxu1 %v660_v35 }
 0x22e   : > { %1553 = vmatprep.subr.bf16.mxu1 %v1695_v8 }
 0x230   : > { %766 = vrot.lane.b32.xlu1 %v653_v36, %s1698_s29  ;;  %s1706_s29 = smov 24  }
 0x234   : > { %877 = vrot.lane.b32.xlu1 %v653_v36, %s1697_s28  ;;  %1550 = vmatmul.mubr.msk.bf16.vlgmr.msra.gmra.mrb[8].mxu1 %vm655_vm2, %v653_v36  ;;  %s1705_s28 = smov 16  }
 0x235   : > { %1555 = vmatprep.mubr.msk.bf16.mxu1 %vm1696_vm1, %v1695_v8 }
 0x238   : > { %990 = vrot.lane.b32.xlu1 %v1849_v33, %s1699_s30 }
 0x23c   : > { %988 = vrot.lane.b32.xlu1 %v653_v36, %s1699_s30 }
 0x29e   : > { %v769_v37 = vpop.permute.xlu1 %768  ;;  %v880_v40 = vpop.permute.xlu0 %879 }
 0x29f   : > { %v774_v38 = vsel %vm655_vm2, %v769_v37, 0  ;;  %v885_v42 = vsel %vm655_vm2, %v880_v40, 0 }
 0x2a0   : > { %1560 = vmatpush3.bf16.xpose.msra.mxu0 %v774_v38 }
 0x2a1   : > { %1571 = vmatprep.subr.bf16.mxu0 %v1695_v8 }
 0x2a2   : > { %v767_v39 = vpop.permute.xlu1 %766 }
 0x2a6   : > { %v878_v41 = vpop.permute.xlu1 %877 }
 0x2a7   : > { %1562 = vmatmul.mubr.msk.bf16.vlgmr.msra.gmra.mrb[0].mxu0 %vm655_vm2, %v767_v39 }
 0x2a8   : > { %1572 = vmatpush3.bf16.xpose.msra.mxu0 %v885_v42  ;;  %1573 = vmatprep.mubr.msk.bf16.mxu0 %vm1696_vm1, %v1695_v8 }
 0x2a9   : > { %1583 = vmatprep.subr.bf16.mxu0 %v1695_v8 }
 0x2aa   : > { %v991_v43 = vpop.permute.xlu1 %990 }
 0x2ab   : > { %v996_v44 = vsel %vm655_vm2, %v991_v43, 0 }
 0x2ae   : > { %v989_v45 = vpop.permute.xlu1 %988 }
 0x2af   : > { %1574 = vmatmul.mubr.msk.bf16.vlgmr.msra.gmra.mrb[4].mxu0 %vm655_vm2, %v878_v41 }
 0x2b0   : > { %1584 = vmatpush3.bf16.xpose.msra.mxu0 %v996_v44  ;;  %1585 = vmatprep.mubr.msk.bf16.mxu0 %vm1696_vm1, %v1695_v8 }
 0x2b1   : > { %1595 = vmatprep.subr.bf16.mxu0 %v1695_v8 }
 0x2b7   : > { %1586 = vmatmul.mubr.msk.bf16.vlgmr.msra.gmra.mrb[8].mxu0 %vm655_vm2, %v989_v45 }
 0x2b8   : > { %1599 = vmatprep.mubr.msk.bf16.mxu0 %vm1696_vm1, %v1695_v8 }
 0x307   : > { %v696_v46 = vpop.f32.mrb[8].mxu1 }
 0x308   : > { %v702_v47 = vmul.f32 0.35355338, %v696_v46  ;;  %v1551_v48 = vpop.f32.mrb[9].mxu1 }
 0x309   : > { %v699_v49 = vpop.f32.mrb[10].mxu1 }
 0x30a   : > { %v1552_v50 = vpop.f32.mrb[11].mxu1  ;;  %v703_v51 = vsel %vm655_vm2, %v702_v47, -inf }
 0x30b   : > { %704 = vmax.xlane.f32.xlu1 %v703_v51 }
 0x37a   : > { %v810_v52 = vpop.f32.mrb[0].mxu0 }
 0x37b   : > { %v816_v53 = vmul.f32 0.35355338, %v810_v52  ;;  %v1563_v54 = vpop.f32.mrb[1].mxu0 }
 0x37c   : > { %v813_v55 = vpop.f32.mrb[2].mxu0 }
 0x37d   : > { %v1564_v56 = vpop.f32.mrb[3].mxu0  ;;  %v817_v57 = vsel %vm655_vm2, %v816_v53, -inf }
 0x37e   : > { %818 = vmax.xlane.f32.xlu0 %v817_v57 }
 0x382   : > { %v921_v58 = vpop.f32.mrb[4].mxu0 }
 0x383   : > { %v927_v59 = vmul.f32 0.35355338, %v921_v58  ;;  %v1575_v60 = vpop.f32.mrb[5].mxu0 }
 0x384   : > { %v924_v61 = vpop.f32.mrb[6].mxu0  ;;  %v1655_v60 = vld [vmem:[%s1997_s7] sm:$0xff]  }
 0x385   : > { %v1576_v62 = vpop.f32.mrb[7].mxu0  ;;  %v928_v63 = vsel %vm655_vm2, %v927_v59, -inf  ;;  %1596 = vmatpush3.bf16.msra.mxu0 %v1655_v60  ;;  %v1656_v61 = vld [vmem:[%s1997_s7 + $0x8] sm:$0xff]  }
 0x386   : > { %929 = vmax.xlane.f32.xlu1 %v928_v63  ;;  %1597 = vmatprep.subr.bf16.mxu0 %v1695_v8 }
 0x389   : > { %1598 = vmatpush3.bf16.msra.mxu0 %v1656_v61 }
 0x38a   : > { %v1032_v1 = vpop.f32.mrb[8].mxu0  ;;  %1611 = vmatprep.subr.bf16.mxu0 %v1695_v8 }
 0x38b   : > { %v1038_v2 = vmul.f32 0.35355338, %v1032_v1  ;;  %v1587_v3 = vpop.f32.mrb[9].mxu0 }
 0x38c   : > { %v1035_v4 = vpop.f32.mrb[10].mxu0 }
 0x38d   : > { %v1588_v5 = vpop.f32.mrb[11].mxu0  ;;  %v1039_v6 = vsel %vm655_vm2, %v1038_v2, -inf }
 0x38e   : > { %1040 = vmax.xlane.f32.xlu1 %v1039_v6 }
 0x398   : > { %v705_v7 = vpop.xlane.xlu1 %704 }
 0x399   : > { %v706_v9 = vsub.f32 %v702_v47, %v705_v7 }
 0x39b   : > { %v707_v10 = vmul.f32 1.442695, %v706_v9 }
 0x39d   : > { %1669 = vpow2.f32 %v707_v10 }
 0x3a7   : > { %v1670_v11 = vpop.eup %1669 }
 0x3a8   : > { %v709_v12 = vsel %vm655_vm2, %v1670_v11, 0.0 }
 0x3a9   : > { %710 = vadd.xlane.f32.xlu0 %v709_v12 }
 0x40b   : > { %v819_v13 = vpop.xlane.xlu0 %818 }
 0x40c   : > { %v820_v14 = vsub.f32 %v816_v53, %v819_v13 }
 0x40e   : > { %v821_v15 = vmul.f32 1.442695, %v820_v14 }
 0x410   : > { %1671 = vpow2.f32 %v821_v15  ;;  %v1473_v15 = vld [vmem:[%s1998_s8] ss:$0 sm:$0xff] }
 0x413   : > { %v930_v16 = vpop.xlane.xlu1 %929 }
 0x414   : > { %v931_v17 = vsub.f32 %v927_v59, %v930_v16 }
 0x416   : > { %v932_v18 = vmul.f32 1.442695, %v931_v17 }
 0x418   : > { %1673 = vpow2.f32 %v932_v18 }
 0x41a   : > { %v1672_v19 = vpop.eup %1671 }
 0x41b   : > { %v823_v20 = vsel %vm655_vm2, %v1672_v19, 0.0  ;;  %v1041_v23 = vpop.xlane.xlu1 %1040 }
 0x41c   : > { %824 = vadd.xlane.f32.xlu1 %v823_v20  ;;  %v1042_v24 = vsub.f32 %v1038_v2, %v1041_v23 }
 0x41e   : > { %v1043_v25 = vmul.f32 1.442695, %v1042_v24 }
 0x420   : > { %1675 = vpow2.f32 %v1043_v25 }
 0x422   : > { %v1674_v21 = vpop.eup %1673 }
 0x423   : > { %v934_v22 = vsel %vm655_vm2, %v1674_v21, 0.0 }
 0x424   : > { %935 = vadd.xlane.f32.xlu0 %v934_v22 }
 0x42a   : > { %v1676_v26 = vpop.eup %1675 }
 0x42b   : > { %v1045_v27 = vsel %vm655_vm2, %v1676_v26, 0.0 }
 0x42d   : > { %829 = vrot.lane.b32.xlu1 %v1849_v33, %s1700_s16 }
 0x436   : > { %v711_v28 = vpop.xlane.xlu0 %710 }
 0x437   : > { %1677 = vrcp.f32 %v711_v28  ;;  %v1657_v28 = vld [vmem:[%s2001_s11] sm:$0xff]  }
 0x43a   : > { %716 = vrot.lane.b32.xlu0 %v1849_v33, %s1701_s17 }
 0x43e   : > { %1051 = vrot.lane.b32.xlu0 %v1849_v33, %s1702_s21 }
 0x441   : > { %v1678_v30 = vpop.eup %1677 }
 0x442   : > { %v713_v32 = vmul.f32 %v1678_v30, %v1670_v11  ;;  %v1660_v30 = vld [vmem:[%s2003_s13 + $0x8] sm:$0xff]  }
 0x444   : > { %v714_v37 = vpack.c.bf16 %v713_v32, %v713_v32  ;;  %v1662_v32 = vld [vmem:[%s2003_s13 + $0x18] sm:$0xff]  }
 0x451   : > { %1046 = vadd.xlane.f32.xlu1 %v1045_v27 }
 0x462   : > { %940 = vrot.lane.b32.xlu1 %v1849_v33, %s1703_s22 }
 0x4a9   : > { %v825_v29 = vpop.xlane.xlu1 %824 }
 0x4aa   : > { %1679 = vrcp.f32 %v825_v29  ;;  %v1659_v29 = vld [vmem:[%s2003_s13] sm:$0xff]  }
 0x4ad   : > { %v830_v36 = vpop.permute.xlu1 %829 }
 0x4ae   : > { %v835_v39 = vsel %vm721_vm3, %v830_v36, 0 }
 0x4b1   : > { %v936_v31 = vpop.xlane.xlu0 %935 }
 0x4b2   : > { %1681 = vrcp.f32 %v936_v31  ;;  %v1661_v31 = vld [vmem:[%s2003_s13 + $0x10] sm:$0xff]  }
 0x4b4   : > { %v1680_v38 = vpop.eup %1679 }
 0x4b5   : > { %v717_v34 = vpop.permute.xlu0 %716  ;;  %v827_v33 = vmul.f32 %v1680_v38, %v1672_v19 }
 0x4b6   : > { %v723_v35 = vsel %vm721_vm3, %v717_v34, 0  ;;  %v1663_v34 = vld [vmem:[%s2003_s13 + $0x20] sm:$0xff]  }
 0x4b7   : > { %1554 = vmatpush3.bf16.msra.mxu1 %v723_v35  ;;  %v828_v40 = vpack.c.bf16 %v827_v33, %v827_v33  ;;  %v1664_v35 = vld [vmem:[%s2003_s13 + $0x28] sm:$0xff]   ;;  %v1477_v33 = vld [vmem:[%s1999_s9] ss:$0 sm:$0xff] }
 0x4b8   : > { %1565 = vmatprep.subr.bf16.mxu1 %v1695_v8 }
 0x4b9   : > { %v1052_v46 = vpop.permute.xlu0 %1051 }
 0x4ba   : > { %1556 = vmatmul.mubr.msk.bf16.vlgmr.msra.gmra.mrb[12].mxu1 %vm655_vm2, %v714_v37  ;;  %v1057_v48 = vsel %vm721_vm3, %v1052_v46, 0  ;;  %v1666_v46 = vld [vmem:[%s2003_s13 + $0x38] sm:$0xff]  }
 0x4bb   : > { %1566 = vmatpush3.bf16.msra.mxu1 %v835_v39  ;;  %1567 = vmatprep.mubr.msk.bf16.mxu1 %vm1696_vm1, %v1695_v8 }
 0x4bc   : > { %1577 = vmatprep.subr.bf16.mxu1 %v1695_v8  ;;  %v1682_v41 = vpop.eup %1681 }
 0x4bd   : > { %v938_v43 = vmul.f32 %v1682_v41, %v1674_v21  ;;  %v1478_v41 = vld [vmem:[%s2000_s10] ss:$0 sm:$0xff] }
 0x4bf   : > { %v939_v47 = vpack.c.bf16 %v938_v43, %v938_v43 }
 0x4c2   : > { %1568 = vmatmul.mubr.msk.bf16.vlgmr.msra.gmra.mrb[16].mxu1 %vm655_vm2, %v828_v40 }
 0x4c3   : > { %1579 = vmatprep.mubr.msk.bf16.mxu1 %vm1696_vm1, %v1695_v8 }
 0x4de   : > { %v1047_v42 = vpop.xlane.xlu1 %1046 }
 0x4df   : > { %1683 = vrcp.f32 %v1047_v42 }
 0x4e2   : > { %v941_v44 = vpop.permute.xlu1 %940 }
 0x4e3   : > { %v946_v45 = vsel %vm721_vm3, %v941_v44, 0 }
 0x4e4   : > { %1578 = vmatpush3.bf16.msra.mxu1 %v946_v45  ;;  %v1665_v45 = vld [vmem:[%s2003_s13 + $0x30] sm:$0xff]  }
 0x4e5   : > { %1589 = vmatprep.subr.bf16.mxu1 %v1695_v8 }
 0x4e7   : > { %1580 = vmatmul.mubr.msk.bf16.vlgmr.msra.gmra.mrb[20].mxu1 %vm655_vm2, %v939_v47  ;;  %v1479_v47 = vld [vmem:[%s2002_s12] ss:$0 sm:$0xff] }
 0x4e8   : > { %1590 = vmatpush3.bf16.msra.mxu1 %v1057_v48  ;;  %1591 = vmatprep.mubr.msk.bf16.mxu1 %vm1696_vm1, %v1695_v8 }
 0x4e9   : > { %v1684_v49 = vpop.eup %1683  ;;  %1603 = vmatprep.subr.bf16.mxu1 %v1695_v8 }
 0x4ea   : > { %v1049_v50 = vmul.f32 %v1684_v49, %v1676_v26 }
 0x4ec   : > { %v1050_v51 = vpack.c.bf16 %v1049_v50, %v1049_v50 }
 0x4ef   : > { %1592 = vmatmul.mubr.msk.bf16.vlgmr.msra.gmra.mrb[24].mxu1 %vm655_vm2, %v1050_v51 }
 0x4f0   : > { %1607 = vmatprep.mubr.msk.bf16.mxu1 %vm1696_vm1, %v1695_v8  ;;  %1604 = vmatpush3.bf16.msra.mxu1 %v1657_v28 }
 0x4f1   : > { %1605 = vmatprep.subr.bf16.mxu1 %v1695_v8 }
 0x58d   : > { %v759_v52 = vpop.f32.mrb[12].mxu1 }
 0x58e   : > { %v1557_v53 = vpop.f32.mrb[13].mxu1 }
 0x58f   : > { %v762_v54 = vpop.f32.mrb[14].mxu1 }
 0x590   : > { %v1558_v55 = vpop.f32.mrb[15].mxu1 }
 0x595   : > { %v871_v56 = vpop.f32.mrb[16].mxu1 }
 0x596   : > { %1100 = vrot.lane.b32.xlu1 %v871_v56, %s1704_s23  ;;  %v1569_v57 = vpop.f32.mrb[17].mxu1 }
 0x597   : > { %v874_v58 = vpop.f32.mrb[18].mxu1 }
 0x598   : > { %v1570_v59 = vpop.f32.mrb[19].mxu1 }
 0x5ba   : > { %v982_v62 = vpop.f32.mrb[20].mxu1 }
 0x5bb   : > { %1104 = vrot.lane.b32.xlu0 %v982_v62, %s1705_s28  ;;  %v1581_v63 = vpop.f32.mrb[21].mxu1 }
 0x5bc   : > { %v985_v1 = vpop.f32.mrb[22].mxu1 }
 0x5bd   : > { %v1582_v2 = vpop.f32.mrb[23].mxu1 }
 0x5c2   : > { %v1093_v3 = vpop.f32.mrb[24].mxu1 }
 0x5c3   : > { %1108 = vrot.lane.b32.xlu1 %v1093_v3, %s1706_s29  ;;  %v1593_v4 = vpop.f32.mrb[25].mxu1 }
 0x5c4   : > { %v1096_v5 = vpop.f32.mrb[26].mxu1 }
 0x5c5   : > { %v1594_v6 = vpop.f32.mrb[27].mxu1 }
 0x608   : > { %v1101_v7 = vpop.permute.xlu1 %1100 }
 0x609   : > { %v1111_v10 = vsel %vm655_vm2, %v759_v52, %v1101_v7 }
 0x62d   : > { %v1105_v9 = vpop.permute.xlu0 %1104 }
 0x62e   : > { %v1113_v11 = vsel %vm1112_vm4, %v1111_v10, %v1105_v9 }
 0x635   : > { %v1109_v12 = vpop.permute.xlu1 %1108 }
 0x636   : > { %v1115_v13 = vsel %vm1114_vm5, %v1113_v11, %v1109_v12 }
 0x637   : > { %v1116_v14 = vpack.c.bf16 %v1115_v13, %v1115_v13 }
 0x639   : > { %1600 = vmatmul.mubr.msk.bf16.vlgmr.msra.gmra.mrb[12].mxu0 %vm494_vm0, %v1116_v14 }
 0x63a   : > { %1627 = vmatprep.mubr.msk.bf16.mxu0 %vm1696_vm1, %v1695_v8  ;;  %1612 = vmatpush3.bf16.msra.mxu0 %v1659_v29 }
 0x63b   : > { %1613 = vmatprep.subr.bf16.mxu0 %v1695_v8 }
 0x63e   : > { %1614 = vmatpush3.bf16.msra.mxu0 %v1660_v30 }
 0x63f   : > { %1615 = vmatprep.subr.bf16.mxu0 %v1695_v8 }
 0x642   : > { %1616 = vmatpush3.bf16.msra.mxu0 %v1661_v31 }
 0x643   : > { %1617 = vmatprep.subr.bf16.mxu0 %v1695_v8 }
 0x646   : > { %1618 = vmatpush3.bf16.msra.mxu0 %v1662_v32 }
 0x647   : > { %1619 = vmatprep.subr.bf16.mxu0 %v1695_v8 }
 0x64a   : > { %1620 = vmatpush3.bf16.msra.mxu0 %v1663_v34 }
 0x64b   : > { %1621 = vmatprep.subr.bf16.mxu0 %v1695_v8 }
 0x64e   : > { %1622 = vmatpush3.bf16.msra.mxu0 %v1664_v35 }
 0x64f   : > { %1623 = vmatprep.subr.bf16.mxu0 %v1695_v8 }
 0x652   : > { %1624 = vmatpush3.bf16.msra.mxu0 %v1665_v45 }
 0x653   : > { %1625 = vmatprep.subr.bf16.mxu0 %v1695_v8  ;;  %v1483_v8 = vld [vmem:[%s2004_s14] ss:$0 sm:$0xff] }
 0x656   : > { %1626 = vmatpush3.bf16.msra.mxu0 %v1666_v46 }
 0x70c   : > { %v1177_v16 = vpop.f32.mrb[12].mxu0 }
 0x70d   : > { %v1178_v17 = vadd.f32 %v1473_v15, %v1177_v16  ;;  %v1601_v18 = vpop.f32.mrb[13].mxu0 }
 0x70e   : > { %v1180_v19 = vpop.f32.mrb[14].mxu0 }
 0x70f   : > { %v1923_v20 = vadd.f32 %v1178_v17, %v1803_v0  ;;  %v1602_v21 = vpop.f32.mrb[15].mxu0  ;;  %v1658_v0 = vld [vmem:[%s2001_s11 + $0x8] sm:$0xff]  }
 0x710   : > { %1606 = vmatpush3.bf16.msra.mxu1 %v1658_v0 }
 0x711   : > { %v1186_v22 = vsel %vm494_vm0, %v1923_v20, 0.0 }
 0x712   : > { %1187 = vadd.xlane.f32.xlu0 %v1186_v22 }
 0x79f   : > { %v1188_v23 = vpop.xlane.xlu0 %1187 }
 0x7a0   : > { %v1189_v24 = vmul.f32 0.03125, %v1188_v23 }
 0x7a2   : > { %v1190_v25 = vsub.f32 %v1923_v20, %v1189_v24 }
 0x7a4   : > { %v1191_v26 = vmul.f32 %v1190_v25, %v1190_v25 }
 0x7a6   : > { %v1192_v27 = vsel %vm494_vm0, %v1191_v26, 0.0 }
 0x7a7   : > { %1193 = vadd.xlane.f32.xlu1 %v1192_v27 }
 0x834   : > { %v1194_v36 = vpop.xlane.xlu1 %1193 }
 0x835   : > { %v1195_v37 = vmul.f32 0.03125, %v1194_v36 }
 0x837   : > { %v1196_v38 = vadd.f32 1e-05, %v1195_v37 }
 0x839   : > { %1685 = vrsqrt.f32 %v1196_v38 }
 0x843   : > { %v1686_v39 = vpop.eup %1685 }
 0x844   : > { %v1198_v40 = vmul.f32 %v1686_v39, %v1190_v25 }
 0x846   : > { %v1205_v42 = vmul.f32 %v1477_v33, %v1198_v40 }
 0x848   : > { %v1212_v43 = vadd.f32 %v1478_v41, %v1205_v42 }
 0x84a   : > { %v1213_v44 = vpack.c.bf16 %v1212_v43, %v1212_v43 }
 0x84c   : > { %1608 = vmatmul.mubr.msk.bf16.vlgmr.msra.gmra.mrb[28].mxu1 %vm494_vm0, %v1213_v44 }
 0x91f   : > { %v1274_v48 = vpop.f32.mrb[28].mxu1 }
 0x920   : > { %v1275_v49 = vadd.f32 %v1479_v47, %v1274_v48  ;;  %v1609_v50 = vpop.f32.mrb[29].mxu1 }
 0x921   : > { %v1277_v51 = vpop.f32.mrb[30].mxu1 }
 0x922   : > { %v1280_v52 = vmax.f32 %v1275_v49, 0.0  ;;  %v1610_v53 = vpop.f32.mrb[31].mxu1 }
 0x924   : > { %v1281_v54 = vpack.c.bf16 %v1280_v52, %v1280_v52 }
 0x926   : > { %1628 = vmatmul.mubr.bf16.vlgmr.msra.gmra.mrb[16].mxu0 %v1281_v54 }
 0x9f9   : > { %v1387_v55 = vpop.f32.mrb[16].mxu0 }
 0x9fa   : > { %v1388_v56 = vadd.f32 %v1483_v8, %v1387_v55  ;;  %v1629_v57 = vpop.f32.mrb[17].mxu0 }
 0x9fb   : > { %v1390_v58 = vpop.f32.mrb[18].mxu0 }
 0x9fc   : > { %v1393_v59 = vadd.f32 %v1388_v56, %v1923_v20  ;;  %v1630_v60 = vpop.f32.mrb[19].mxu0 }
 0x9fe   : > { %1394 = vst.msk [vmem:[%s489_s26] sm:$0xff] %vm494_vm0, %v1393_v59 }
 0x9ff PF: > { %s25_s18 = sadd.s32 1, %s1693_s18  }
 0xa00   : > { %p22_p4 = scmp.ge.s32.totalorder %s25_s18, 4  }
 0xa02   :  { %24 = sbr.rel (!%p22_p4) target bundleno = 1 (0x1), region = 110 }

// kernel: language_model_forward.7
= control target key start
LH: loop header
LB: loop body
LE: loop exit
PB: predicated region body
PF: predicated region fallthrough
CT: control target
= control target key end

     0   :  { %s1880_s21 = smov 0   ;;  %s2090_s0 = inlined_call_operand.vmem [shape: f32[2,8,32], index: 0, kind: input, shape index: {}]   ;;  %s2091_s1 = inlined_call_operand.vmem [shape: f32[2,8,32], index: 1, kind: input, shape index: {}]   ;;  %s2092_s2 = inlined_call_operand.vmem [shape: f32[1,32], index: 2, kind: input, shape index: {}]   ;;  %s2093_s3 = inlined_call_operand.vmem [shape: f32[1,32], index: 3, kind: input, shape index: {}]   ;;  %s2094_s4 = inlined_call_operand.vmem [shape: bf16[32,32], index: 4, kind: input, shape index: {}]   ;;  %s2095_s5 = inlined_call_operand.vmem [shape: f32[1,32], index: 5, kind: input, shape index: {}]   ;;  %s2096_s6 = inlined_call_operand.vmem [shape: bf16[32,64], index: 6, kind: input, shape index: {}]   ;;  %s2097_s7 = inlined_call_operand.vmem [shape: f32[1,64], index: 7, kind: input, shape index: {}]   ;;  %s2098_s8 = inlined_call_operand.vmem [shape: bf16[32,32], index: 8, kind: input, shape index: {}]   ;;  %s2099_s9 = inlined_call_operand.vmem [shape: f32[1,32], index: 9, kind: input, shape index: {}]   ;;  %s2100_s10 = inlined_call_operand.vmem [shape: f32[1,32], index: 10, kind: input, shape index: {}]   ;;  %s2101_s11 = inlined_call_operand.vmem [shape: f32[1,32], index: 11, kind: input, shape index: {}]   ;;  %s2102_s12 = inlined_call_operand.vmem [shape: bf16[32,128], index: 12, kind: input, shape index: {}]   ;;  %s2103_s13 = inlined_call_operand.vmem [shape: f32[1,128], index: 13, kind: input, shape index: {}]   ;;  %s2104_s14 = inlined_call_operand.vmem [shape: bf16[128,32], index: 14, kind: input, shape index: {}]   ;;  %s2105_s15 = inlined_call_operand.vmem [shape: f32[1,32], index: 15, kind: input, shape index: {}]   ;;  %s2106_s16 = inlined_call_operand.vmem [shape: f32[2,8,32], index: 16, kind: output, shape index: {}]  }
   0x1   :  { %2107 = sst [smem:[#allocation2_spill]] %s2090_s0 }
   0x2 LB: > { %s1533_s22 = sadd.s32 4294967295, %s1781_s21   ;;  %p1537_p0 = scmp.ge.s32.totalorder %s1781_s21, 1  ;;  %s1781_s21 = sphi %s1880_s21, %s26_s21  }
   0x3   : > { %p470_p1 = scmp.lt.s32.totalorder %s1781_s21, 3 }
   0x5   : > { %p471_p2 = pnand %p1537_p0, %p470_p1 }
   0x6   : > { %p522_p3 = scmp.lt.s32.totalorder (!%p471_p2), %s1533_s22, 1  ;;  %vm538_vm0 = vcmask (!%p471_p2), 261120   ;;  %s2108_s26 = sld [smem:[#allocation2_spill]] (!%p471_p2)  ;;  %v1737_v14 = vld [vmem:[%s2094_s4] sm:$0xff] (!%p471_p2)   ;;  %v1783_v15 = vmov (!%p471_p2), 0.0   ;;  %v1738_v16 = vld [vmem:[%s2094_s4 + $0x8] sm:$0xff] (!%p471_p2)   ;;  %v717_v61 = vlaneseq (!%p471_p2) }
   0x7   : > { %474 = sbr.rel (%p471_p2) target bundleno = 2564 (0xa04), region = 84  ;;  %1617 = vmatprep.subr.bf16.mxu1 (!%p471_p2), %v1783_v15  ;;  %1645 = vmatprep.subr.bf16.mxu0 (!%p471_p2), %v1783_v15  ;;  %vm1784_vm1 = vmmov (!%p471_p2), 0   ;;  %v1541_v24 = vld [vmem:[%s2092_s2] ss:$0 sm:$0xff] (!%p471_p2)  ;;  %v1740_v34 = vld [vmem:[%s2096_s6 + $0x8] sm:$0xff] (!%p471_p2)   ;;  %s1785_s17 = smov (!%p471_p2), 120  }
   0x8   : > { %1618 = vmatpush3.bf16.msra.mxu1 (!%p471_p2), %v1737_v14  ;;  %1621 = vmatprep.mubr.msk.bf16.mxu1 (!%p471_p2), %vm1784_vm1, %v1783_v15  ;;  %v1542_v26 = vld [vmem:[%s2093_s3] ss:$0 sm:$0xff] (!%p471_p2)  ;;  %vm724_vm2 = vcmask (!%p471_p2), 64512   ;;  %s1786_s20 = smov (!%p471_p2), 112   ;;  %v718_v62 = vshrl.u32 (!%p471_p2), %v717_v61, 7  ;;  %v720_v63 = vand.u32 (!%p471_p2), 127, %v717_v61 }
   0x9   : > { %1619 = vmatprep.subr.bf16.mxu1 (!%p471_p2), %v1783_v15  ;;  %1647 = vmatprep.mubr.msk.bf16.mxu0 (!%p471_p2), %vm1784_vm1, %v1783_v15  ;;  %v1739_v31 = vld [vmem:[%s2096_s6] sm:$0xff] (!%p471_p2)   ;;  %s1788_s24 = smov (!%p471_p2), 88   ;;  %s1789_s25 = smov (!%p471_p2), 80   ;;  %vm791_vm4 = vcmask (!%p471_p2), 1043456   ;;  %vm1185_vm5 = vcmask (!%p471_p2), 130048   ;;  %vm1187_vm6 = vcmask (!%p471_p2), 195584  }
   0xa   : > { %v1543_v37 = vld [vmem:[%s2095_s5] ss:$0 sm:$0xff] (!%p471_p2)  ;;  %vm721_vm3 = vcmp.le.s32.totalorder (!%p471_p2), %v720_v63, %v718_v62  ;;  %s1793_s18 = smov (!%p471_p2), 16   ;;  %s1794_s19 = smov (!%p471_p2), 24  }
   0xb   : > { %v1547_v44 = vld [vmem:[%s2097_s7] ss:$0 sm:$0xff] (!%p471_p2) }
   0xc   : > { %1620 = vmatpush3.bf16.msra.mxu1 (!%p471_p2), %v1738_v16 }
   0xd   : > { %1625 = vmatprep.subr.bf16.mxu1 (!%p471_p2), %v1783_v15 }
   0xe   : > { %s2110_s22 = smov (!%p522_p3, %s1533_s22), 1 }
   0xf   : > { %s1888_s23 = sshll.u32 %s2110_s22, 3  ;;  %s1787_s22 = smov 104  }
  0x10   : > { %s525_s27 = scalar_lea.vmem %s2108_s26, %s1888_s23  ;;  %s529_s30 = scalar_lea.vmem %s2091_s1, %s1888_s23 }
  0x11   : > { %v1894_v0 = vld [vmem:[%s525_s27] sm:$0xff]  ;;  %s1790_s26 = smov 96   ;;  %s1791_s27 = smov 72  }
  0x12   : > { %v539_v1 = vsel %vm538_vm0, %v1894_v0, 0.0  ;;  %v567_v2 = vld [vmem:[%s529_s30] sm:$0xff]  ;;  %s533_s28 = scalar_lea.vmem %s2106_s16, %s1888_s23 }
  0x13   : > { %540 = vadd.xlane.f32.xlu0 %v539_v1  ;;  %v568_v3 = vsel %vm538_vm0, %v567_v2, 0.0 }
  0x17   : > { %569 = vadd.xlane.f32.xlu0 %v568_v3 }
  0xa0   : > { %v541_v4 = vpop.xlane.xlu0 %540 }
  0xa1   : > { %v543_v5 = vmul.f32 0.03125, %v541_v4 }
  0xa3   : > { %v544_v6 = vsub.f32 %v1894_v0, %v543_v5 }
  0xa4   : > { %v570_v7 = vpop.xlane.xlu0 %569 }
  0xa5   : > { %v571_v8 = vmul.f32 0.03125, %v570_v7  ;;  %v545_v9 = vmul.f32 %v544_v6, %v544_v6 }
  0xa7   : > { %v572_v10 = vsub.f32 %v567_v2, %v571_v8  ;;  %v546_v11 = vsel %vm538_vm0, %v545_v9, 0.0 }
  0xa8   : > { %547 = vadd.xlane.f32.xlu1 %v546_v11 }
  0xa9   : > { %v573_v12 = vmul.f32 %v572_v10, %v572_v10 }
  0xab   : > { %v574_v13 = vsel %vm538_vm0, %v573_v12, 0.0 }
  0xac   : > { %575 = vadd.xlane.f32.xlu1 %v574_v13 }
 0x135   : > { %v548_v17 = vpop.xlane.xlu1 %547 }
 0x136   : > { %v549_v18 = vmul.f32 0.03125, %v548_v17 }
 0x138   : > { %v550_v19 = vadd.f32 1e-05, %v549_v18 }
 0x139   : > { %v576_v20 = vpop.xlane.xlu1 %575 }
 0x13a   : > { %1753 = vrsqrt.f32 %v550_v19  ;;  %v577_v21 = vmul.f32 0.03125, %v576_v20 }
 0x13c   : > { %v578_v22 = vadd.f32 1e-05, %v577_v21 }
 0x13e   : > { %1755 = vrsqrt.f32 %v578_v22 }
 0x144   : > { %v1754_v23 = vpop.eup %1753 }
 0x145   : > { %v552_v25 = vmul.f32 %v1754_v23, %v544_v6 }
 0x147   : > { %v559_v27 = vmul.f32 %v1541_v24, %v552_v25 }
 0x148   : > { %v1756_v28 = vpop.eup %1755 }
 0x149   : > { %v580_v29 = vmul.f32 %v1756_v28, %v572_v10  ;;  %v566_v30 = vadd.f32 %v1542_v26, %v559_v27 }
 0x14b   : > { %v581_v32 = vmul.f32 %v1541_v24, %v580_v29  ;;  %v583_v33 = vpack.c.bf16 %v566_v30, %v566_v30 }
 0x14d   : > { %1622 = vmatmul.mubr.msk.bf16.vlgmr.msra.gmra.mrb[0].mxu1 %vm538_vm0, %v583_v33  ;;  %v582_v35 = vadd.f32 %v1542_v26, %v581_v32 }
 0x14e   : > { %1626 = vmatpush3.bf16.msra.mxu1 %v1739_v31  ;;  %1629 = vmatprep.mubr.msk.bf16.mxu1 %vm1784_vm1, %v1783_v15 }
 0x14f   : > { %1627 = vmatprep.subr.bf16.mxu1 %v1783_v15  ;;  %v650_v36 = vpack.c.bf16 %v582_v35, %v582_v35 }
 0x152   : > { %1628 = vmatpush3.bf16.msra.mxu1 %v1740_v34 }
 0x153   : > { %1633 = vmatprep.subr.bf16.mxu1 %v1783_v15 }
 0x155   : > { %1630 = vmatmul.mubr.msk.bf16.vlgmr.msra.gmra.mrb[4].mxu1 %vm538_vm0, %v650_v36 }
 0x156   : > { %1635 = vmatprep.mubr.msk.bf16.mxu1 %vm1784_vm1, %v1783_v15 }
 0x220   : > { %v644_v38 = vpop.f32.mrb[0].mxu1 }
 0x221   : > { %v645_v39 = vadd.f32 %v1543_v37, %v644_v38  ;;  %v1623_v40 = vpop.f32.mrb[1].mxu1 }
 0x222   : > { %v647_v41 = vpop.f32.mrb[2].mxu1 }
 0x223   : > { %v722_v42 = vpack.c.bf16 %v645_v39, %v645_v39  ;;  %v1624_v43 = vpop.f32.mrb[3].mxu1 }
 0x225   : > { %836 = vrot.lane.b32.xlu1 %v722_v42, %s1785_s17 }
 0x228   : > { %v711_v45 = vpop.f32.mrb[4].mxu1 }
 0x229   : > { %v712_v46 = vadd.f32 %v1547_v44, %v711_v45  ;;  %v1631_v47 = vpop.f32.mrb[5].mxu1 }
 0x22a   : > { %v714_v48 = vpop.f32.mrb[6].mxu1 }
 0x22b   : > { %v1946_v49 = vpack.c.bf16 %v712_v46, %v712_v46  ;;  %v1632_v50 = vpop.f32.mrb[7].mxu1 }
 0x22d   : > { %950 = vrot.lane.b32.xlu1 %v1946_v49, %s1786_s20  ;;  %838 = vrot.lane.b32.xlu0 %v1946_v49, %s1785_s17  ;;  %v729_v51 = vsel %vm724_vm2, %v1946_v49, 0  ;;  %s1792_s17 = smov 8  }
 0x22e   : > { %1634 = vmatpush3.bf16.xpose.msra.mxu1 %v729_v51 }
 0x22f   : > { %1639 = vmatprep.subr.bf16.mxu1 %v1783_v15 }
 0x231   : > { %948 = vrot.lane.b32.xlu1 %v722_v42, %s1786_s20  ;;  %1062 = vrot.lane.b32.xlu0 %v1946_v49, %s1787_s22 }
 0x235   : > { %1060 = vrot.lane.b32.xlu1 %v722_v42, %s1787_s22  ;;  %1636 = vmatmul.mubr.msk.bf16.vlgmr.msra.gmra.mrb[8].mxu1 %vm724_vm2, %v722_v42 }
 0x236   : > { %1641 = vmatprep.mubr.msk.bf16.mxu1 %vm1784_vm1, %v1783_v15 }
 0x297   : > { %v837_v54 = vpop.permute.xlu1 %836 }
 0x29f   : > { %v839_v52 = vpop.permute.xlu0 %838  ;;  %v951_v55 = vpop.permute.xlu1 %950 }
 0x2a0   : > { %v844_v53 = vsel %vm724_vm2, %v839_v52, 0  ;;  %v956_v56 = vsel %vm724_vm2, %v951_v55, 0 }
 0x2a1   : > { %1646 = vmatpush3.bf16.xpose.msra.mxu0 %v844_v53 }
 0x2a2   : > { %1657 = vmatprep.subr.bf16.mxu0 %v1783_v15 }
 0x2a3   : > { %v1063_v57 = vpop.permute.xlu0 %1062  ;;  %v949_v58 = vpop.permute.xlu1 %948 }
 0x2a4   : > { %v1068_v59 = vsel %vm724_vm2, %v1063_v57, 0 }
 0x2a7   : > { %v1061_v60 = vpop.permute.xlu1 %1060 }
 0x2a8   : > { %1648 = vmatmul.mubr.msk.bf16.vlgmr.msra.gmra.mrb[0].mxu0 %vm724_vm2, %v837_v54 }
 0x2a9   : > { %1658 = vmatpush3.bf16.xpose.msra.mxu0 %v956_v56  ;;  %1659 = vmatprep.mubr.msk.bf16.mxu0 %vm1784_vm1, %v1783_v15 }
 0x2aa   : > { %1669 = vmatprep.subr.bf16.mxu0 %v1783_v15 }
 0x2b0   : > { %1660 = vmatmul.mubr.msk.bf16.vlgmr.msra.gmra.mrb[4].mxu0 %vm724_vm2, %v949_v58 }
 0x2b1   : > { %1670 = vmatpush3.bf16.xpose.msra.mxu0 %v1068_v59  ;;  %1671 = vmatprep.mubr.msk.bf16.mxu0 %vm1784_vm1, %v1783_v15 }
 0x2b2   : > { %1681 = vmatprep.subr.bf16.mxu0 %v1783_v15 }
 0x2b8   : > { %1672 = vmatmul.mubr.msk.bf16.vlgmr.msra.gmra.mrb[8].mxu0 %vm724_vm2, %v1061_v60 }
 0x2b9   : > { %1685 = vmatprep.mubr.msk.bf16.mxu0 %vm1784_vm1, %v1783_v15 }
 0x308   : > { %v765_v1 = vpop.f32.mrb[8].mxu1 }
 0x309   : > { %v771_v2 = vmul.f32 0.35355338, %v765_v1  ;;  %v1637_v3 = vpop.f32.mrb[9].mxu1 }
 0x30a   : > { %v768_v4 = vpop.f32.mrb[10].mxu1 }
 0x30b   : > { %v1638_v5 = vpop.f32.mrb[11].mxu1  ;;  %v772_v6 = vsel %vm721_vm3, %v771_v2, -1e+30 }
 0x30c   : > { %v773_v7 = vsel %vm724_vm2, %v772_v6, -inf }
 0x30d   : > { %774 = vmax.xlane.f32.xlu0 %v773_v7 }
 0x37b   : > { %v880_v8 = vpop.f32.mrb[0].mxu0 }
 0x37c   : > { %v886_v9 = vmul.f32 0.35355338, %v880_v8  ;;  %v1649_v10 = vpop.f32.mrb[1].mxu0 }
 0x37d   : > { %v883_v11 = vpop.f32.mrb[2].mxu0 }
 0x37e   : > { %v1650_v12 = vpop.f32.mrb[3].mxu0  ;;  %v887_v13 = vsel %vm721_vm3, %v886_v9, -1e+30 }
 0x37f   : > { %v888_v14 = vsel %vm724_vm2, %v887_v13, -inf }
 0x380   : > { %889 = vmax.xlane.f32.xlu1 %v888_v14 }
 0x383   : > { %v992_v16 = vpop.f32.mrb[4].mxu0 }
 0x384   : > { %v998_v17 = vmul.f32 0.35355338, %v992_v16  ;;  %v1661_v18 = vpop.f32.mrb[5].mxu0  ;;  %v1741_v16 = vld [vmem:[%s2098_s8] sm:$0xff]  }
 0x385   : > { %v995_v19 = vpop.f32.mrb[6].mxu0  ;;  %1682 = vmatpush3.bf16.msra.mxu0 %v1741_v16 }
 0x386   : > { %v1662_v20 = vpop.f32.mrb[7].mxu0  ;;  %v999_v21 = vsel %vm721_vm3, %v998_v17, -1e+30  ;;  %v1742_v17 = vld [vmem:[%s2098_s8 + $0x8] sm:$0xff]   ;;  %1683 = vmatprep.subr.bf16.mxu0 %v1783_v15 }
 0x387   : > { %v1000_v22 = vsel %vm724_vm2, %v999_v21, -inf }
 0x388   : > { %1001 = vmax.xlane.f32.xlu0 %v1000_v22 }
 0x389   : > { %1684 = vmatpush3.bf16.msra.mxu0 %v1742_v17 }
 0x38a   : > { %1697 = vmatprep.subr.bf16.mxu0 %v1783_v15 }
 0x38b   : > { %v1104_v23 = vpop.f32.mrb[8].mxu0 }
 0x38c   : > { %v1110_v24 = vmul.f32 0.35355338, %v1104_v23  ;;  %v1673_v25 = vpop.f32.mrb[9].mxu0 }
 0x38d   : > { %v1107_v26 = vpop.f32.mrb[10].mxu0 }
 0x38e   : > { %v1674_v27 = vpop.f32.mrb[11].mxu0  ;;  %v1111_v28 = vsel %vm721_vm3, %v1110_v24, -1e+30 }
 0x38f   : > { %v1112_v29 = vsel %vm724_vm2, %v1111_v28, -inf }
 0x390   : > { %1113 = vmax.xlane.f32.xlu0 %v1112_v29 }
 0x39a   : > { %v775_v30 = vpop.xlane.xlu0 %774 }
 0x39b   : > { %v776_v31 = vsub.f32 %v772_v6, %v775_v30 }
 0x39d   : > { %v777_v32 = vmul.f32 1.442695, %v776_v31 }
 0x39f   : > { %1757 = vpow2.f32 %v777_v32 }
 0x3a9   : > { %v1758_v33 = vpop.eup %1757 }
 0x3aa   : > { %v779_v34 = vsel %vm724_vm2, %v1758_v33, 0.0 }
 0x3ab   : > { %780 = vadd.xlane.f32.xlu0 %v779_v34 }
 0x40d   : > { %v890_v35 = vpop.xlane.xlu1 %889 }
 0x40e   : > { %v891_v36 = vsub.f32 %v887_v13, %v890_v35 }
 0x410   : > { %v892_v37 = vmul.f32 1.442695, %v891_v36 }
 0x412   : > { %1759 = vpow2.f32 %v892_v37  ;;  %v1559_v37 = vld [vmem:[%s2099_s9] ss:$0 sm:$0xff] }
 0x415   : > { %v1002_v38 = vpop.xlane.xlu0 %1001 }
 0x416   : > { %v1003_v39 = vsub.f32 %v999_v21, %v1002_v38 }
 0x418   : > { %v1004_v40 = vmul.f32 1.442695, %v1003_v39 }
 0x41a   : > { %1761 = vpow2.f32 %v1004_v40 }
 0x41c   : > { %v1760_v41 = vpop.eup %1759 }
 0x41d   : > { %v894_v42 = vsel %vm724_vm2, %v1760_v41, 0.0  ;;  %v1114_v45 = vpop.xlane.xlu0 %1113 }
 0x41e   : > { %895 = vadd.xlane.f32.xlu1 %v894_v42  ;;  %v1115_v46 = vsub.f32 %v1111_v28, %v1114_v45 }
 0x420   : > { %v1116_v47 = vmul.f32 1.442695, %v1115_v46 }
 0x422   : > { %1763 = vpow2.f32 %v1116_v47 }
 0x424   : > { %v1762_v43 = vpop.eup %1761 }
 0x425   : > { %v1006_v44 = vsel %vm724_vm2, %v1762_v43, 0.0 }
 0x426   : > { %1007 = vadd.xlane.f32.xlu0 %v1006_v44 }
 0x42c   : > { %v1764_v48 = vpop.eup %1763 }
 0x42d   : > { %v1118_v50 = vsel %vm724_vm2, %v1764_v48, 0.0 }
 0x42f   : > { %900 = vrot.lane.b32.xlu1 %v1946_v49, %s1788_s24 }
 0x433   : > { %1012 = vrot.lane.b32.xlu1 %v1946_v49, %s1789_s25 }
 0x438   : > { %v781_v51 = vpop.xlane.xlu0 %780 }
 0x439   : > { %1765 = vrcp.f32 %v781_v51  ;;  %v1743_v51 = vld [vmem:[%s2102_s12] sm:$0xff]  }
 0x43c   : > { %786 = vrot.lane.b32.xlu0 %v1946_v49, %s1790_s26 }
 0x443   : > { %v1766_v53 = vpop.eup %1765 }
 0x444   : > { %v783_v55 = vmul.f32 %v1766_v53, %v1758_v33  ;;  %v1746_v53 = vld [vmem:[%s2104_s14 + $0x8] sm:$0xff]  }
 0x446   : > { %v784_v59 = vpack.c.bf16 %v783_v55, %v783_v55  ;;  %v1748_v55 = vld [vmem:[%s2104_s14 + $0x18] sm:$0xff]  }
 0x457   : > { %1119 = vadd.xlane.f32.xlu1 %v1118_v50 }
 0x468   : > { %1124 = vrot.lane.b32.xlu1 %v1946_v49, %s1791_s27 }
 0x4ab   : > { %v896_v52 = vpop.xlane.xlu1 %895 }
 0x4ac   : > { %1767 = vrcp.f32 %v896_v52  ;;  %v1745_v52 = vld [vmem:[%s2104_s14] sm:$0xff]  }
 0x4af   : > { %v901_v58 = vpop.permute.xlu1 %900 }
 0x4b0   : > { %v906_v49 = vsel %vm791_vm4, %v901_v58, 0 }
 0x4b3   : > { %v1008_v54 = vpop.xlane.xlu0 %1007  ;;  %v1013_v62 = vpop.permute.xlu1 %1012 }
 0x4b4   : > { %1769 = vrcp.f32 %v1008_v54  ;;  %v1018_v2 = vsel %vm791_vm4, %v1013_v62, 0  ;;  %v1747_v54 = vld [vmem:[%s2104_s14 + $0x10] sm:$0xff]  }
 0x4b6   : > { %v1768_v60 = vpop.eup %1767 }
 0x4b7   : > { %v787_v56 = vpop.permute.xlu0 %786  ;;  %v898_v61 = vmul.f32 %v1768_v60, %v1760_v41 }
 0x4b8   : > { %v793_v57 = vsel %vm791_vm4, %v787_v56, 0  ;;  %v1749_v56 = vld [vmem:[%s2104_s14 + $0x20] sm:$0xff]  }
 0x4b9   : > { %1640 = vmatpush3.bf16.msra.mxu1 %v793_v57  ;;  %v899_v63 = vpack.c.bf16 %v898_v61, %v898_v61  ;;  %v1750_v57 = vld [vmem:[%s2104_s14 + $0x28] sm:$0xff]   ;;  %v1563_v61 = vld [vmem:[%s2100_s10] ss:$0 sm:$0xff] }
 0x4ba   : > { %1651 = vmatprep.subr.bf16.mxu1 %v1783_v15 }
 0x4bc   : > { %1642 = vmatmul.mubr.msk.bf16.vlgmr.msra.gmra.mrb[12].mxu1 %vm724_vm2, %v784_v59 }
 0x4bd   : > { %1652 = vmatpush3.bf16.msra.mxu1 %v906_v49  ;;  %1653 = vmatprep.mubr.msk.bf16.mxu1 %vm1784_vm1, %v1783_v15 }
 0x4be   : > { %1663 = vmatprep.subr.bf16.mxu1 %v1783_v15  ;;  %v1770_v1 = vpop.eup %1769 }
 0x4bf   : > { %v1010_v3 = vmul.f32 %v1770_v1, %v1762_v43 }
 0x4c1   : > { %v1011_v4 = vpack.c.bf16 %v1010_v3, %v1010_v3 }
 0x4c4   : > { %1654 = vmatmul.mubr.msk.bf16.vlgmr.msra.gmra.mrb[16].mxu1 %vm724_vm2, %v899_v63  ;;  %v1564_v63 = vld [vmem:[%s2101_s11] ss:$0 sm:$0xff] }
 0x4c5   : > { %1664 = vmatpush3.bf16.msra.mxu1 %v1018_v2  ;;  %1665 = vmatprep.mubr.msk.bf16.mxu1 %vm1784_vm1, %v1783_v15 }
 0x4c6   : > { %1675 = vmatprep.subr.bf16.mxu1 %v1783_v15 }
 0x4cc   : > { %1666 = vmatmul.mubr.msk.bf16.vlgmr.msra.gmra.mrb[20].mxu1 %vm724_vm2, %v1011_v4  ;;  %v1751_v4 = vld [vmem:[%s2104_s14 + $0x30] sm:$0xff]  }
 0x4cd   : > { %1677 = vmatprep.mubr.msk.bf16.mxu1 %vm1784_vm1, %v1783_v15 }
 0x4e4   : > { %v1120_v5 = vpop.xlane.xlu1 %1119 }
 0x4e5   : > { %1771 = vrcp.f32 %v1120_v5  ;;  %v1752_v5 = vld [vmem:[%s2104_s14 + $0x38] sm:$0xff]  }
 0x4e8   : > { %v1125_v6 = vpop.permute.xlu1 %1124 }
 0x4e9   : > { %v1130_v7 = vsel %vm791_vm4, %v1125_v6, 0  ;;  %v1565_v6 = vld [vmem:[%s2103_s13] ss:$0 sm:$0xff] }
 0x4ea   : > { %1676 = vmatpush3.bf16.msra.mxu1 %v1130_v7 }
 0x4eb   : > { %1689 = vmatprep.subr.bf16.mxu1 %v1783_v15 }
 0x4ef   : > { %v1772_v8 = vpop.eup %1771 }
 0x4f0   : > { %v1122_v9 = vmul.f32 %v1772_v8, %v1764_v48 }
 0x4f2   : > { %v1123_v10 = vpack.c.bf16 %v1122_v9, %v1122_v9 }
 0x4f4   : > { %1678 = vmatmul.mubr.msk.bf16.vlgmr.msra.gmra.mrb[24].mxu1 %vm724_vm2, %v1123_v10 }
 0x4f5   : > { %1693 = vmatprep.mubr.msk.bf16.mxu1 %vm1784_vm1, %v1783_v15  ;;  %1690 = vmatpush3.bf16.msra.mxu1 %v1743_v51 }
 0x4f6   : > { %1691 = vmatprep.subr.bf16.mxu1 %v1783_v15 }
 0x58f   : > { %v829_v11 = vpop.f32.mrb[12].mxu1 }
 0x590   : > { %v1643_v12 = vpop.f32.mrb[13].mxu1 }
 0x591   : > { %v832_v13 = vpop.f32.mrb[14].mxu1 }
 0x592   : > { %v1644_v14 = vpop.f32.mrb[15].mxu1 }
 0x597   : > { %v942_v18 = vpop.f32.mrb[16].mxu1 }
 0x598   : > { %1173 = vrot.lane.b32.xlu0 %v942_v18, %s1792_s17  ;;  %v1655_v19 = vpop.f32.mrb[17].mxu1 }
 0x599   : > { %v945_v20 = vpop.f32.mrb[18].mxu1 }
 0x59a   : > { %v1656_v21 = vpop.f32.mrb[19].mxu1 }
 0x59f   : > { %v1054_v22 = vpop.f32.mrb[20].mxu1 }
 0x5a0   : > { %1177 = vrot.lane.b32.xlu1 %v1054_v22, %s1793_s18  ;;  %v1667_v23 = vpop.f32.mrb[21].mxu1 }
 0x5a1   : > { %v1057_v24 = vpop.f32.mrb[22].mxu1 }
 0x5a2   : > { %v1668_v25 = vpop.f32.mrb[23].mxu1 }
 0x5c7   : > { %v1166_v26 = vpop.f32.mrb[24].mxu1 }
 0x5c8   : > { %1181 = vrot.lane.b32.xlu0 %v1166_v26, %s1794_s19  ;;  %v1679_v27 = vpop.f32.mrb[25].mxu1 }
 0x5c9   : > { %v1169_v28 = vpop.f32.mrb[26].mxu1 }
 0x5ca   : > { %v1680_v29 = vpop.f32.mrb[27].mxu1 }
 0x60a   : > { %v1174_v30 = vpop.permute.xlu0 %1173 }
 0x60b   : > { %v1184_v32 = vsel %vm724_vm2, %v829_v11, %v1174_v30 }
 0x612   : > { %v1178_v31 = vpop.permute.xlu1 %1177 }
 0x613   : > { %v1186_v33 = vsel %vm1185_vm5, %v1184_v32, %v1178_v31 }
 0x63a   : > { %v1182_v34 = vpop.permute.xlu0 %1181 }
 0x63b   : > { %v1188_v35 = vsel %vm1187_vm6, %v1186_v33, %v1182_v34 }
 0x63c   : > { %v1189_v36 = vpack.c.bf16 %v1188_v35, %v1188_v35 }
 0x63e   : > { %1686 = vmatmul.mubr.msk.bf16.vlgmr.msra.gmra.mrb[12].mxu0 %vm538_vm0, %v1189_v36 }
 0x63f   : > { %1713 = vmatprep.mubr.msk.bf16.mxu0 %vm1784_vm1, %v1783_v15  ;;  %1698 = vmatpush3.bf16.msra.mxu0 %v1745_v52 }
 0x640   : > { %1699 = vmatprep.subr.bf16.mxu0 %v1783_v15 }
 0x643   : > { %1700 = vmatpush3.bf16.msra.mxu0 %v1746_v53 }
 0x644   : > { %1701 = vmatprep.subr.bf16.mxu0 %v1783_v15 }
 0x647   : > { %1702 = vmatpush3.bf16.msra.mxu0 %v1747_v54 }
 0x648   : > { %1703 = vmatprep.subr.bf16.mxu0 %v1783_v15 }
 0x64b   : > { %1704 = vmatpush3.bf16.msra.mxu0 %v1748_v55 }
 0x64c   : > { %1705 = vmatprep.subr.bf16.mxu0 %v1783_v15 }
 0x64f   : > { %1706 = vmatpush3.bf16.msra.mxu0 %v1749_v56 }
 0x650   : > { %1707 = vmatprep.subr.bf16.mxu0 %v1783_v15 }
 0x653   : > { %1708 = vmatpush3.bf16.msra.mxu0 %v1750_v57 }
 0x654   : > { %1709 = vmatprep.subr.bf16.mxu0 %v1783_v15 }
 0x657   : > { %1710 = vmatpush3.bf16.msra.mxu0 %v1751_v4 }
 0x658   : > { %1711 = vmatprep.subr.bf16.mxu0 %v1783_v15  ;;  %v1569_v15 = vld [vmem:[%s2105_s15] ss:$0 sm:$0xff] }
 0x65b   : > { %1712 = vmatpush3.bf16.msra.mxu0 %v1752_v5 }
 0x711   : > { %v1250_v38 = vpop.f32.mrb[12].mxu0 }
 0x712   : > { %v1251_v39 = vadd.f32 %v1559_v37, %v1250_v38  ;;  %v1687_v40 = vpop.f32.mrb[13].mxu0 }
 0x713   : > { %v1253_v41 = vpop.f32.mrb[14].mxu0 }
 0x714   : > { %v2024_v42 = vadd.f32 %v1251_v39, %v1894_v0  ;;  %v1688_v43 = vpop.f32.mrb[15].mxu0  ;;  %v1744_v0 = vld [vmem:[%s2102_s12 + $0x8] sm:$0xff]  }
 0x715   : > { %1692 = vmatpush3.bf16.msra.mxu1 %v1744_v0 }
 0x716   : > { %v1259_v44 = vsel %vm538_vm0, %v2024_v42, 0.0 }
 0x717   : > { %1260 = vadd.xlane.f32.xlu1 %v1259_v44 }
 0x7a4   : > { %v1261_v45 = vpop.xlane.xlu1 %1260 }
 0x7a5   : > { %v1262_v46 = vmul.f32 0.03125, %v1261_v45 }
 0x7a7   : > { %v1263_v47 = vsub.f32 %v2024_v42, %v1262_v46 }
 0x7a9   : > { %v1264_v48 = vmul.f32 %v1263_v47, %v1263_v47 }
 0x7ab   : > { %v1265_v50 = vsel %vm538_vm0, %v1264_v48, 0.0 }
 0x7ac   : > { %1266 = vadd.xlane.f32.xlu0 %v1265_v50 }
 0x839   : > { %v1267_v58 = vpop.xlane.xlu0 %1266 }
 0x83a   : > { %v1268_v59 = vmul.f32 0.03125, %v1267_v58 }
 0x83c   : > { %v1269_v60 = vadd.f32 1e-05, %v1268_v59 }
 0x83e   : > { %1773 = vrsqrt.f32 %v1269_v60 }
 0x848   : > { %v1774_v49 = vpop.eup %1773 }
 0x849   : > { %v1271_v62 = vmul.f32 %v1774_v49, %v1263_v47 }
 0x84b   : > { %v1278_v1 = vmul.f32 %v1563_v61, %v1271_v62 }
 0x84d   : > { %v1285_v2 = vadd.f32 %v1564_v63, %v1278_v1 }
 0x84f   : > { %v1286_v3 = vpack.c.bf16 %v1285_v2, %v1285_v2 }
 0x851   : > { %1694 = vmatmul.mubr.msk.bf16.vlgmr.msra.gmra.mrb[28].mxu1 %vm538_vm0, %v1286_v3 }
 0x924   : > { %v1347_v7 = vpop.f32.mrb[28].mxu1 }
 0x925   : > { %v1348_v8 = vadd.f32 %v1565_v6, %v1347_v7  ;;  %v1695_v9 = vpop.f32.mrb[29].mxu1 }
 0x926   : > { %v1350_v10 = vpop.f32.mrb[30].mxu1 }
 0x927   : > { %v1353_v11 = vmax.f32 %v1348_v8, 0.0  ;;  %v1696_v12 = vpop.f32.mrb[31].mxu1 }
 0x929   : > { %v1354_v13 = vpack.c.bf16 %v1353_v11, %v1353_v11 }
 0x92b   : > { %1714 = vmatmul.mubr.bf16.vlgmr.msra.gmra.mrb[16].mxu0 %v1354_v13 }
 0x9fe   : > { %v1460_v14 = vpop.f32.mrb[16].mxu0 }
 0x9ff   : > { %v1461_v16 = vadd.f32 %v1569_v15, %v1460_v14  ;;  %v1715_v17 = vpop.f32.mrb[17].mxu0 }
 0xa00   : > { %v1463_v18 = vpop.f32.mrb[18].mxu0 }
 0xa01   : > { %v1466_v19 = vadd.f32 %v1461_v16, %v2024_v42  ;;  %v1716_v20 = vpop.f32.mrb[19].mxu0 }
 0xa03   : > { %1467 = vst.msk [vmem:[%s533_s28] sm:$0xff] %vm538_vm0, %v1466_v19 }
 0xa04 PF: > { %s26_s21 = sadd.s32 1, %s1781_s21  }
 0xa05   : > { %p23_p4 = scmp.ge.s32.totalorder %s26_s21, 4  }
 0xa07   :  { %25 = sbr.rel (!%p23_p4) target bundleno = 2 (0x2), region = 117 }

</bundles_post_ra>
